<compile_context>
chip_gen: v5e
topology: v5e:2x2
jax: 0.10.0
libtpu: 0.0.40
codegen_flags: <defaults>
</compile_context>

<pallas_src>
import jax
import jax.numpy as jnp
from jax import lax
from jax.experimental import pallas as pl
from jax.experimental.pallas import tpu as pltpu

LRELU_SLOPE = 0.01           # PyTorch LeakyReLU default
BN_EPS = 1e-5
RES_SCALE = 0.2              # Up_Inception_Resnet residual scale


def _pick_vmem_limit():
    """Generation-aware VMEM budget: ~3/4 of physical, capped at 100 MiB."""
    try:
        cap = int(pltpu.get_tpu_info().vmem_capacity_bytes)
        return int(min(cap * 3 // 4, 100 * 1024 * 1024))
    except Exception:
        return 48 * 1024 * 1024      # safe on v5e/v6e/v7x


VMEM_LIMIT = _pick_vmem_limit()


# ------------------------------ kernel helpers ------------------------------

def _lrelu(y):
    return jnp.where(y >= 0.0, y, LRELU_SLOPE * y)


def _affine_lrelu(y, scale, shift):
    return _lrelu(y * scale + shift)


def _conv_rows3(x_f32, w_stacked, scale, shift):
    """'same' conv with 3 kernel rows in merged (H, W*C) layout.

    w_stacked: (3*W*Cin, W*Cout) bf16 with row blocks ordered [ky=0, ky=1, ky=2]
    (all W-taps of a kernel row already folded in).  Row shifts use pltpu.roll
    (XLU) + a boundary mask (VPU) -- exact zero padding, no 0/1 shift matmuls --
    and the 3 taps are K-stacked into a single MXU push.
    """
    h = x_f32.shape[0]
    rows = lax.broadcasted_iota(jnp.int32, x_f32.shape, 0)
    x_dn = jnp.where(rows >= 1, pltpu.roll(x_f32, 1, axis=0), 0.0)          # x[i-1]
    x_up = jnp.where(rows < h - 1, pltpu.roll(x_f32, h - 1, axis=0), 0.0)   # x[i+1]
    lhs = jnp.concatenate([x_dn, x_f32, x_up], axis=-1).astype(jnp.bfloat16)
    y = jnp.dot(lhs, w_stacked, preferred_element_type=jnp.float32)
    return _affine_lrelu(y, scale, shift)


# -------------------------------- kernel body --------------------------------

def _up_kernel(x2_ref, x1_ref,
               r2_ref, r1_ref, upb_ref,
               rc1_ref, s1_ref, t1_ref,
               rc2_ref, s2_ref, t2_ref,
               w0_ref, w1a_ref, w1b_ref, w1c_ref, wfc_ref,
               fcb_ref, sc_ref, sh_ref,
               o_ref, act_ref):
    j = pl.program_id(1)

    # ---- j == 0: ConvTranspose2d(k=2,s=2) + DoubleConv, result kept in VMEM --
    @pl.when(j == 0)
    def _():
        # torch.cat([x2, x1], dim=1) folded into the split right factors r2/r1.
        # Inputs arrive row-duplicated (row i = x[i//2]); the output-row parity
        # selects the dy=0 / dy=1 deconv result (VPU select, no scatter matmul).
        x2 = x2_ref[0]                                   # (2H, W*C2) bf16
        x1 = x1_ref[0]                                   # (2H, W*C1) bf16
        z0 = (jnp.dot(x2, r2_ref[0], preferred_element_type=jnp.float32) +
              jnp.dot(x1, r1_ref[0], preferred_element_type=jnp.float32))
        z1 = (jnp.dot(x2, r2_ref[1], preferred_element_type=jnp.float32) +
              jnp.dot(x1, r1_ref[1], preferred_element_type=jnp.float32))
        rows = lax.broadcasted_iota(jnp.int32, z0.shape, 0)
        up = jnp.where((rows % 2) == 0, z0, z1) + upb_ref[...]

        # DoubleConv: (3x3 conv -> BN -> LeakyReLU) x 2, K-stacked taps.
        hdc = _conv_rows3(up, rc1_ref[...], s1_ref[...], t1_ref[...])
        hdc = _conv_rows3(hdc, rc2_ref[...], s2_ref[...], t2_ref[...])
        act_ref[...] = hdc

    # ---- every step: one Up_Inception_Resnet block (weights of block j) -----
    x = act_ref[...]                                     # (2H, 2W*C) f32
    xb = x.astype(jnp.bfloat16)
    sc = sc_ref[0]                                       # (4, 2W*C) BN scales
    sh = sh_ref[0]                                       # (4, 2W*C) BN shifts

    # branch 0: 1x1 conv -> BN -> LeakyReLU
    x0 = _affine_lrelu(
        jnp.dot(xb, w0_ref[0], preferred_element_type=jnp.float32),
        sc[0:1], sh[0:1])

    # branch 1: 1x1 -> (1,3) -> (3,1), each conv -> BN -> LeakyReLU
    h1 = _affine_lrelu(
        jnp.dot(xb, w1a_ref[0], preferred_element_type=jnp.float32),
        sc[1:2], sh[1:2])
    h1 = _affine_lrelu(
        jnp.dot(h1.astype(jnp.bfloat16), w1b_ref[0],
                preferred_element_type=jnp.float32),
        sc[2:3], sh[2:3])
    h1 = _conv_rows3(h1, w1c_ref[0], sc[3:4], sh[3:4])

    # 1x1 projection over concat([x0, h1]) as one K-stacked matmul,
    # then residual scale + add + LeakyReLU.
    cat = jnp.concatenate(
        [x0.astype(jnp.bfloat16), h1.astype(jnp.bfloat16)], axis=-1)
    y = (jnp.dot(cat, wfc_ref[0], preferred_element_type=jnp.float32)
         + fcb_ref[0]) * RES_SCALE + x
    act_ref[...] = _lrelu(y)

    @pl.when(j == pl.num_programs(1) - 1)
    def _():
        o_ref[0] = act_ref[...].astype(o_ref.dtype)


# --------------------------- structured weight prep ---------------------------

def bn_fold(bn, conv_bias=None):
    """Fold eval-mode BatchNorm (+ optional conv bias) into (scale, shift)."""
    s = bn["gamma"] / jnp.sqrt(bn["var"] + BN_EPS)
    b = conv_bias if conv_bias is not None else jnp.zeros_like(bn["mean"])
    t = bn["beta"] + (b - bn["mean"]) * s
    return s, t


def _kron_tap(w_oc_ic, width):
    """(Cout, Cin) tap -> block-diag (width*Cin, width*Cout) = kron(I, w.T)."""
    return jnp.kron(jnp.eye(width, dtype=w_oc_ic.dtype), jnp.transpose(w_oc_ic))


def _row_conv_weight(w_oihw, ky, width):
    """Fold all KW taps of kernel row ky into one (width*Cin, width*Cout)
    matrix; truncated shifted identities implement 'same' zero padding in W."""
    kw = w_oihw.shape[3]
    pad = (kw - 1) // 2
    r = None
    for kx in range(kw):
        a = jnp.transpose(w_oihw[:, :, ky, kx])           # (Cin, Cout)
        shift = jnp.eye(width, k=-(kx - pad), dtype=a.dtype)
        blk = jnp.kron(shift, a)
        r = blk if r is None else r + blk
    return r


def _stacked_row_conv(w_oihw, width):
    """K-stack the 3 kernel rows: (3*width*Cin, width*Cout), order ky=0,1,2."""
    return jnp.concatenate(
        [_row_conv_weight(w_oihw, ky, width) for ky in range(3)], axis=0)


def _deconv_right(w_icohw, dy, width):
    """ConvTranspose2d(k=2,s=2) right factor for output-row parity dy:
    (Cin_part, Cout, 2, 2) -> (width*Cin_part, 2*width*Cout)."""
    r = None
    for dx in range(2):
        up = jnp.zeros((width, 2 * width), w_icohw.dtype)
        up = up.at[jnp.arange(width), 2 * jnp.arange(width) + dx].set(1.0)
        blk = jnp.kron(up, w_icohw[:, :, dy, dx])
        r = blk if r is None else r + blk
    return r


def _tile_row(v, width):
    """Per-channel vector -> (1, width*C) row matching merged j = w*C + c."""
    return jnp.tile(v.astype(jnp.float32), width)[None, :]


def prepare_up_weights(params, h, w, c2):
    """Build all structured weights ONCE (outside the jitted hot path)."""
    bf = jnp.bfloat16
    out_ch = params["dc_w1"].shape[0]
    w2 = 2 * w

    # ConvTranspose (+ folded torch.cat([x2, x1])): x2 channels come first.
    up_w = params["up_w"]                                 # (c2 + c1, mid, 2, 2)
    r2 = jnp.stack([_deconv_right(up_w[:c2], dy, w) for dy in range(2)]).astype(bf)
    r1 = jnp.stack([_deconv_right(up_w[c2:], dy, w) for dy in range(2)]).astype(bf)
    upb = _tile_row(params["up_b"], w2)

    s1, t1 = bn_fold(params["dc_bn1"], params["dc_b1"])
    s2, t2 = bn_fold(params["dc_bn2"], params["dc_b2"])

    w0, w1a, w1b, w1c, wfc, fcb, scs, shs = ([] for _ in range(8))
    for p in params["inception"]:
        w0.append(_kron_tap(p["b0_w"][:, :, 0, 0], w2))
        w1a.append(_kron_tap(p["b1a_w"][:, :, 0, 0], w2))
        w1b.append(_row_conv_weight(p["b1b_w"], 0, w2))            # (1,3) conv
        w1c.append(jnp.concatenate(                                 # (3,1) conv
            [_kron_tap(p["b1c_w"][:, :, ky, 0], w2) for ky in range(3)], axis=0))
        wfc.append(jnp.concatenate(                                 # fused concat
            [_kron_tap(p["fc_w"][:, :out_ch, 0, 0], w2),
             _kron_tap(p["fc_w"][:, out_ch:, 0, 0], w2)], axis=0))
        fcb.append(_tile_row(p["fc_b"], w2))
        sc_rows, sh_rows = [], []
        for bn_name in ("bn0", "bn1a", "bn1b", "bn1c"):
            s_, t_ = bn_fold(p[bn_name])
            sc_rows.append(_tile_row(s_, w2)[0])
            sh_rows.append(_tile_row(t_, w2)[0])
        scs.append(jnp.stack(sc_rows))
        shs.append(jnp.stack(sh_rows))

    return dict(
        r2=r2, r1=r1, upb=upb,
        rc1=_stacked_row_conv(params["dc_w1"], w2).astype(bf),
        s1=_tile_row(s1, w2), t1=_tile_row(t1, w2),
        rc2=_stacked_row_conv(params["dc_w2"], w2).astype(bf),
        s2=_tile_row(s2, w2), t2=_tile_row(t2, w2),
        w0=jnp.stack(w0).astype(bf), w1a=jnp.stack(w1a).astype(bf),
        w1b=jnp.stack(w1b).astype(bf), w1c=jnp.stack(w1c).astype(bf),
        wfc=jnp.stack(wfc).astype(bf), fcb=jnp.stack(fcb),
        sc=jnp.stack(scs), sh=jnp.stack(shs))


# --------------------------------- Up forward --------------------------------

def up_forward(prep, x1_nchw, x2_nchw):
    # Public layout: NCHW f32 (PyTorch); internal: merged (N, H, W*C).
    n, c1, h, w = x1_nchw.shape
    c2 = x2_nchw.shape[1]
    h2, w2 = 2 * h, 2 * w
    out_ch = prep["s1"].shape[1] // w2
    nb = prep["w0"].shape[0]
    xc = w2 * out_ch
    bf = jnp.bfloat16

    def to_merged_rowdup(x):
        c = x.shape[1]
        m = jnp.transpose(x, (0, 2, 3, 1)).reshape(n, h, w * c)
        return jnp.repeat(m, 2, axis=1).astype(bf)        # row i = x[i // 2]

    x2r = to_merged_rowdup(x2_nchw)
    x1r = to_merged_rowdup(x1_nchw)

    def bspec(shape):       # per-sample input
        return pl.BlockSpec((1,) + tuple(shape[1:]), lambda i, j: (i, 0, 0))

    def cspec(shape):       # grid-invariant weight, single-buffered
        r = len(shape)
        return pl.BlockSpec(tuple(shape), lambda i, j, _r=r: (0,) * _r,
                            pipeline_mode=pl.Buffered(1))

    def wspec(shape):       # per-inception-block weight slab (pipelined over j)
        return pl.BlockSpec((1,) + tuple(shape[1:]), lambda i, j: (j, 0, 0))

    consts = (prep["r2"], prep["r1"], prep["upb"],
              prep["rc1"], prep["s1"], prep["t1"],
              prep["rc2"], prep["s2"], prep["t2"])
    blocked = (prep["w0"], prep["w1a"], prep["w1b"], prep["w1c"],
               prep["wfc"], prep["fcb"], prep["sc"], prep["sh"])

    y = pl.pallas_call(
        _up_kernel,
        out_shape=jax.ShapeDtypeStruct((n, h2, xc), jnp.float32),
        grid_spec=pltpu.PrefetchScalarGridSpec(
            num_scalar_prefetch=0,
            grid=(n, nb),
            in_specs=([bspec(x2r.shape), bspec(x1r.shape)]
                      + [cspec(a.shape) for a in consts]
                      + [wspec(a.shape) for a in blocked]),
            out_specs=pl.BlockSpec((1, h2, xc), lambda i, j: (i, 0, 0)),
            scratch_shapes=[pltpu.VMEM((h2, xc), jnp.float32)],
        ),
        compiler_params=pltpu.CompilerParams(
            dimension_semantics=("parallel", "arbitrary"),
            vmem_limit_bytes=VMEM_LIMIT),
    )(x2r, x1r, *consts, *blocked)

    y = y.reshape(n, h2, w2, out_ch)
    return jnp.transpose(y, (0, 3, 1, 2))


# --------------------------------- demo / init --------------------------------

def init_params(key, in_ch, out_ch):
    keys = iter(jax.random.split(key, 256))

    def nrm(shape, s=0.1):
        return jax.random.normal(next(keys), shape, jnp.float32) * s

    def bn(c):
        return dict(gamma=1.0 + nrm((c,), 0.05), beta=nrm((c,), 0.05),
                    mean=nrm((c,), 0.05), var=1.0 + jnp.abs(nrm((c,), 0.05)))

    mid = in_ch // 2
    p = dict(
        # ConvTranspose2d(in_ch, in_ch//2, 2, 2): weight (Cin, Cout, 2, 2)
        up_w=nrm((in_ch, mid, 2, 2)), up_b=nrm((mid,)),
        # DoubleConv(in_ch//2, out_ch)
        dc_w1=nrm((out_ch, mid, 3, 3)), dc_b1=nrm((out_ch,)), dc_bn1=bn(out_ch),
        dc_w2=nrm((out_ch, out_ch, 3, 3)), dc_b2=nrm((out_ch,)), dc_bn2=bn(out_ch),
        inception=[],
    )
    c = out_ch
    for _ in range(5):
        p["inception"].append(dict(
            b0_w=nrm((c, c, 1, 1)), bn0=bn(c),
            b1a_w=nrm((c, c, 1, 1)), bn1a=bn(c),
            b1b_w=nrm((c, c, 1, 3)), bn1b=bn(c),
            b1c_w=nrm((c, c, 3, 1)), bn1c=bn(c),
            fc_w=nrm((c, 2 * c, 1, 1)), fc_b=nrm((c,)),
        ))
    return p


if __name__ == "__main__":
    key = jax.random.PRNGKey(0)
    in_channels, out_channels = 8, 8
    n, h, w = 2, 8, 8
    k1, k2, k3 = jax.random.split(key, 3)
    # Standard UNet usage: x1 and x2 each carry in_channels // 2 channels (NCHW).
    x1 = jax.random.normal(k1, (n, in_channels // 2, h, w), jnp.float32)
    x2 = jax.random.normal(k2, (n, in_channels // 2, h, w), jnp.float32)
    params = init_params(k3, in_channels, out_channels)

    # Structured-weight construction hoisted out of the jitted hot path.
    prep = jax.block_until_ready(
        prepare_up_weights(params, h, w, in_channels // 2))

    fwd = jax.jit(up_forward)
    out = jax.block_until_ready(fwd(prep, x1, x2))
    assert out.shape == (n, out_channels, 2 * h, 2 * w), out.shape
    assert bool(jnp.all(jnp.isfinite(out)))
    print("KERNEL_OK")
</pallas_src>

<mosaic_0001>
module attributes {stable_mosaic.version = 11 : i64} {
  func.func @_up_kernel(%arg0: i32, %arg1: i32, %arg2: memref<1x16x32xbf16, #tpu.memory_space<vmem>>, %arg3: memref<1x16x32xbf16, #tpu.memory_space<vmem>>, %arg4: memref<2x32x64xbf16, #tpu.memory_space<vmem>>, %arg5: memref<2x32x64xbf16, #tpu.memory_space<vmem>>, %arg6: memref<1x64xf32, #tpu.memory_space<vmem>>, %arg7: memref<192x128xbf16, #tpu.memory_space<vmem>>, %arg8: memref<1x128xf32, #tpu.memory_space<vmem>>, %arg9: memref<1x128xf32, #tpu.memory_space<vmem>>, %arg10: memref<384x128xbf16, #tpu.memory_space<vmem>>, %arg11: memref<1x128xf32, #tpu.memory_space<vmem>>, %arg12: memref<1x128xf32, #tpu.memory_space<vmem>>, %arg13: memref<1x128x128xbf16, #tpu.memory_space<vmem>>, %arg14: memref<1x128x128xbf16, #tpu.memory_space<vmem>>, %arg15: memref<1x128x128xbf16, #tpu.memory_space<vmem>>, %arg16: memref<1x384x128xbf16, #tpu.memory_space<vmem>>, %arg17: memref<1x256x128xbf16, #tpu.memory_space<vmem>>, %arg18: memref<1x1x128xf32, #tpu.memory_space<vmem>>, %arg19: memref<1x4x128xf32, #tpu.memory_space<vmem>>, %arg20: memref<1x4x128xf32, #tpu.memory_space<vmem>>, %arg21: memref<1x16x128xf32, #tpu.memory_space<vmem>>, %arg22: memref<16x128xf32, #tpu.memory_space<vmem>>) attributes {dimension_semantics = [#tpu.dimension_semantics<parallel>, #tpu.dimension_semantics<arbitrary>], iteration_bounds = array<i64: 2, 5>, scalar_prefetch = 0 : i64, scratch_operands = 1 : i64, tpu.core_type = #tpu.core_type<tc>, window_params = [{transform_indices = @transform_0, window_bounds = array<i64: 1, 16, 32>}, {transform_indices = @transform_1, window_bounds = array<i64: 1, 16, 32>}, {pipeline_mode = #tpu.pipeline_mode<synchronous>, transform_indices = @transform_2, window_bounds = array<i64: 2, 32, 64>}, {pipeline_mode = #tpu.pipeline_mode<synchronous>, transform_indices = @transform_3, window_bounds = array<i64: 2, 32, 64>}, {pipeline_mode = #tpu.pipeline_mode<synchronous>, transform_indices = @transform_4, window_bounds = array<i64: 1, 64>}, {pipeline_mode = #tpu.pipeline_mode<synchronous>, transform_indices = @transform_5, window_bounds = array<i64: 192, 128>}, {pipeline_mode = #tpu.pipeline_mode<synchronous>, transform_indices = @transform_6, window_bounds = array<i64: 1, 128>}, {pipeline_mode = #tpu.pipeline_mode<synchronous>, transform_indices = @transform_7, window_bounds = array<i64: 1, 128>}, {pipeline_mode = #tpu.pipeline_mode<synchronous>, transform_indices = @transform_8, window_bounds = array<i64: 384, 128>}, {pipeline_mode = #tpu.pipeline_mode<synchronous>, transform_indices = @transform_9, window_bounds = array<i64: 1, 128>}, {pipeline_mode = #tpu.pipeline_mode<synchronous>, transform_indices = @transform_10, window_bounds = array<i64: 1, 128>}, {transform_indices = @transform_11, window_bounds = array<i64: 1, 128, 128>}, {transform_indices = @transform_12, window_bounds = array<i64: 1, 128, 128>}, {transform_indices = @transform_13, window_bounds = array<i64: 1, 128, 128>}, {transform_indices = @transform_14, window_bounds = array<i64: 1, 384, 128>}, {transform_indices = @transform_15, window_bounds = array<i64: 1, 256, 128>}, {transform_indices = @transform_16, window_bounds = array<i64: 1, 1, 128>}, {transform_indices = @transform_17, window_bounds = array<i64: 1, 4, 128>}, {transform_indices = @transform_18, window_bounds = array<i64: 1, 4, 128>}, {transform_indices = @transform_19, window_bounds = array<i64: 1, 16, 128>}]} {
    %c0_i32 = arith.constant 0 : i32
    %0 = arith.cmpi eq, %arg1, %c0_i32 : i32
    %1 = arith.extui %0 : i1 to i32
    %c0_i32_0 = arith.constant 0 : i32
    %2 = arith.cmpi ne, %1, %c0_i32_0 : i32
    scf.if %2 {
      %c0_48 = arith.constant 0 : index
      %c0_49 = arith.constant 0 : index
      %c0_50 = arith.constant 0 : index
      %101 = vector.load %arg2[%c0_48, %c0_49, %c0_50] : memref<1x16x32xbf16, #tpu.memory_space<vmem>>, vector<1x16x32xbf16>
      %102 = vector.shape_cast %101 : vector<1x16x32xbf16> to vector<16x32xbf16>
      %c0_51 = arith.constant 0 : index
      %c0_52 = arith.constant 0 : index
      %c0_53 = arith.constant 0 : index
      %103 = vector.load %arg3[%c0_51, %c0_52, %c0_53] : memref<1x16x32xbf16, #tpu.memory_space<vmem>>, vector<1x16x32xbf16>
      %104 = vector.shape_cast %103 : vector<1x16x32xbf16> to vector<16x32xbf16>
      %c0_54 = arith.constant 0 : index
      %c0_55 = arith.constant 0 : index
      %c0_56 = arith.constant 0 : index
      %105 = vector.load %arg4[%c0_54, %c0_55, %c0_56] : memref<2x32x64xbf16, #tpu.memory_space<vmem>>, vector<1x32x64xbf16>
      %106 = vector.shape_cast %105 : vector<1x32x64xbf16> to vector<32x64xbf16>
      %cst_57 = arith.constant dense<0.000000e+00> : vector<16x64xf32>
      %107 = tpu.matmul %102, %106, %cst_57 {dimension_numbers = #tpu.dot_dimension_numbers<[1], [0], [0], [1], [0, 0, 1, 1], [], []>} : vector<16x32xbf16>, vector<32x64xbf16>, vector<16x64xf32> -> vector<16x64xf32>
      %c0_58 = arith.constant 0 : index
      %c0_59 = arith.constant 0 : index
      %c0_60 = arith.constant 0 : index
      %108 = vector.load %arg5[%c0_58, %c0_59, %c0_60] : memref<2x32x64xbf16, #tpu.memory_space<vmem>>, vector<1x32x64xbf16>
      %109 = vector.shape_cast %108 : vector<1x32x64xbf16> to vector<32x64xbf16>
      %cst_61 = arith.constant dense<0.000000e+00> : vector<16x64xf32>
      %110 = tpu.matmul %104, %109, %cst_61 {dimension_numbers = #tpu.dot_dimension_numbers<[1], [0], [0], [1], [0, 0, 1, 1], [], []>} : vector<16x32xbf16>, vector<32x64xbf16>, vector<16x64xf32> -> vector<16x64xf32>
      %111 = arith.addf %107, %110 : vector<16x64xf32>
      %c1 = arith.constant 1 : index
      %c0_62 = arith.constant 0 : index
      %c0_63 = arith.constant 0 : index
      %112 = vector.load %arg4[%c1, %c0_62, %c0_63] : memref<2x32x64xbf16, #tpu.memory_space<vmem>>, vector<1x32x64xbf16>
      %113 = vector.shape_cast %112 : vector<1x32x64xbf16> to vector<32x64xbf16>
      %cst_64 = arith.constant dense<0.000000e+00> : vector<16x64xf32>
      %114 = tpu.matmul %102, %113, %cst_64 {dimension_numbers = #tpu.dot_dimension_numbers<[1], [0], [0], [1], [0, 0, 1, 1], [], []>} : vector<16x32xbf16>, vector<32x64xbf16>, vector<16x64xf32> -> vector<16x64xf32>
      %c1_65 = arith.constant 1 : index
      %c0_66 = arith.constant 0 : index
      %c0_67 = arith.constant 0 : index
      %115 = vector.load %arg5[%c1_65, %c0_66, %c0_67] : memref<2x32x64xbf16, #tpu.memory_space<vmem>>, vector<1x32x64xbf16>
      %116 = vector.shape_cast %115 : vector<1x32x64xbf16> to vector<32x64xbf16>
      %cst_68 = arith.constant dense<0.000000e+00> : vector<16x64xf32>
      %117 = tpu.matmul %104, %116, %cst_68 {dimension_numbers = #tpu.dot_dimension_numbers<[1], [0], [0], [1], [0, 0, 1, 1], [], []>} : vector<16x32xbf16>, vector<32x64xbf16>, vector<16x64xf32> -> vector<16x64xf32>
      %118 = arith.addf %114, %117 : vector<16x64xf32>
      %119 = tpu.iota {dimensions = array<i32: 0>} : vector<16x64xi32>
      %c2_i32 = arith.constant 2 : i32
      %c0_i32_69 = arith.constant 0 : i32
      %120 = arith.cmpi eq, %c2_i32, %c0_i32_69 : i32
      %c1_i32_70 = arith.constant 1 : i32
      %121 = arith.select %120, %c1_i32_70, %c2_i32 : i32
      %122 = vector.broadcast %121 : i32 to vector<16x64xi32>
      %123 = arith.remsi %119, %122 : vector<16x64xi32>
      %c0_i32_71 = arith.constant 0 : i32
      %124 = vector.broadcast %c0_i32_71 : i32 to vector<16x64xi32>
      %125 = arith.cmpi ne, %123, %124 : vector<16x64xi32>
      %c0_i32_72 = arith.constant 0 : i32
      %126 = vector.broadcast %c0_i32_72 : i32 to vector<16x64xi32>
      %127 = arith.cmpi slt, %123, %126 : vector<16x64xi32>
      %c0_i32_73 = arith.constant 0 : i32
      %128 = arith.cmpi slt, %121, %c0_i32_73 : i32
      %129 = vector.broadcast %128 : i1 to vector<16x64xi1>
      %130 = vector.broadcast %129 : vector<16x64xi1> to vector<16x64xi1>
      %131 = arith.xori %127, %130 : vector<16x64xi1>
      %132 = arith.andi %131, %125 : vector<16x64xi1>
      %133 = vector.broadcast %121 : i32 to vector<16x64xi32>
      %134 = arith.addi %123, %133 : vector<16x64xi32>
      %135 = arith.select %132, %134, %123 : vector<16x64xi1>, vector<16x64xi32>
      %c0_i32_74 = arith.constant 0 : i32
      %136 = vector.broadcast %c0_i32_74 : i32 to vector<16x64xi32>
      %137 = arith.cmpi eq, %135, %136 : vector<16x64xi32>
      %138 = arith.select %137, %111, %118 : vector<16x64xi1>, vector<16x64xf32>
      %c0_75 = arith.constant 0 : index
      %c0_76 = arith.constant 0 : index
      %139 = vector.load %arg6[%c0_75, %c0_76] : memref<1x64xf32, #tpu.memory_space<vmem>>, vector<1x64xf32>
      %140 = vector.broadcast %139 : vector<1x64xf32> to vector<16x64xf32>
      %141 = arith.addf %138, %140 : vector<16x64xf32>
      %c0_77 = arith.constant 0 : index
      %c0_78 = arith.constant 0 : index
      %142 = vector.load %arg7[%c0_77, %c0_78] : memref<192x128xbf16, #tpu.memory_space<vmem>>, vector<192x128xbf16>
      %c0_79 = arith.constant 0 : index
      %c0_80 = arith.constant 0 : index
      %143 = vector.load %arg8[%c0_79, %c0_80] : memref<1x128xf32, #tpu.memory_space<vmem>>, vector<1x128xf32>
      %c0_81 = arith.constant 0 : index
      %c0_82 = arith.constant 0 : index
      %144 = vector.load %arg9[%c0_81, %c0_82] : memref<1x128xf32, #tpu.memory_space<vmem>>, vector<1x128xf32>
      %145 = tpu.iota {dimensions = array<i32: 0>} : vector<16x64xi32>
      %c1_i32_83 = arith.constant 1 : i32
      %146 = vector.broadcast %c1_i32_83 : i32 to vector<16x64xi32>
      %147 = arith.cmpi sge, %145, %146 : vector<16x64xi32>
      %c1_i32_84 = arith.constant 1 : i32
      %148 = tpu.dynamic_rotate %141 by %c1_i32_84 dim 0 : vector<16x64xf32>, i32 -> vector<16x64xf32>
      %cst_85 = arith.constant 0.000000e+00 : f32
      %149 = vector.broadcast %cst_85 : f32 to vector<16x64xf32>
      %150 = arith.select %147, %148, %149 : vector<16x64xi1>, vector<16x64xf32>
      %c15_i32_86 = arith.constant 15 : i32
      %151 = vector.broadcast %c15_i32_86 : i32 to vector<16x64xi32>
      %152 = arith.cmpi slt, %145, %151 : vector<16x64xi32>
      %c15_i32_87 = arith.constant 15 : i32
      %153 = tpu.dynamic_rotate %141 by %c15_i32_87 dim 0 : vector<16x64xf32>, i32 -> vector<16x64xf32>
      %cst_88 = arith.constant 0.000000e+00 : f32
      %154 = vector.broadcast %cst_88 : f32 to vector<16x64xf32>
      %155 = arith.select %152, %153, %154 : vector<16x64xi1>, vector<16x64xf32>
      %156 = tpu.concatenate %150, %141, %155 in 1 : vector<16x64xf32>, vector<16x64xf32>, vector<16x64xf32> -> vector<16x192xf32>
      %157 = arith.truncf %156 : vector<16x192xf32> to vector<16x192xbf16>
      %cst_89 = arith.constant dense<0.000000e+00> : vector<16x128xf32>
      %158 = tpu.matmul %157, %142, %cst_89 {dimension_numbers = #tpu.dot_dimension_numbers<[1], [0], [0], [1], [0, 0, 1, 1], [], []>} : vector<16x192xbf16>, vector<192x128xbf16>, vector<16x128xf32> -> vector<16x128xf32>
      %159 = vector.broadcast %143 : vector<1x128xf32> to vector<16x128xf32>
      %160 = arith.mulf %158, %159 : vector<16x128xf32>
      %161 = vector.broadcast %144 : vector<1x128xf32> to vector<16x128xf32>
      %162 = arith.addf %160, %161 : vector<16x128xf32>
      %cst_90 = arith.constant 0.000000e+00 : f32
      %163 = vector.broadcast %cst_90 : f32 to vector<16x128xf32>
      %164 = arith.cmpf oge, %162, %163 : vector<16x128xf32>
      %cst_91 = arith.constant 0.00999999977 : f32
      %165 = vector.broadcast %cst_91 : f32 to vector<16x128xf32>
      %166 = arith.mulf %165, %162 : vector<16x128xf32>
      %167 = arith.select %164, %162, %166 : vector<16x128xi1>, vector<16x128xf32>
      %c0_92 = arith.constant 0 : index
      %c0_93 = arith.constant 0 : index
      %168 = vector.load %arg10[%c0_92, %c0_93] : memref<384x128xbf16, #tpu.memory_space<vmem>>, vector<384x128xbf16>
      %c0_94 = arith.constant 0 : index
      %c0_95 = arith.constant 0 : index
      %169 = vector.load %arg11[%c0_94, %c0_95] : memref<1x128xf32, #tpu.memory_space<vmem>>, vector<1x128xf32>
      %c0_96 = arith.constant 0 : index
      %c0_97 = arith.constant 0 : index
      %170 = vector.load %arg12[%c0_96, %c0_97] : memref<1x128xf32, #tpu.memory_space<vmem>>, vector<1x128xf32>
      %171 = tpu.iota {dimensions = array<i32: 0>} : vector<16x128xi32>
      %c1_i32_98 = arith.constant 1 : i32
      %172 = vector.broadcast %c1_i32_98 : i32 to vector<16x128xi32>
      %173 = arith.cmpi sge, %171, %172 : vector<16x128xi32>
      %c1_i32_99 = arith.constant 1 : i32
      %174 = tpu.dynamic_rotate %167 by %c1_i32_99 dim 0 : vector<16x128xf32>, i32 -> vector<16x128xf32>
      %cst_100 = arith.constant 0.000000e+00 : f32
      %175 = vector.broadcast %cst_100 : f32 to vector<16x128xf32>
      %176 = arith.select %173, %174, %175 : vector<16x128xi1>, vector<16x128xf32>
      %c15_i32_101 = arith.constant 15 : i32
      %177 = vector.broadcast %c15_i32_101 : i32 to vector<16x128xi32>
      %178 = arith.cmpi slt, %171, %177 : vector<16x128xi32>
      %c15_i32_102 = arith.constant 15 : i32
      %179 = tpu.dynamic_rotate %167 by %c15_i32_102 dim 0 : vector<16x128xf32>, i32 -> vector<16x128xf32>
      %cst_103 = arith.constant 0.000000e+00 : f32
      %180 = vector.broadcast %cst_103 : f32 to vector<16x128xf32>
      %181 = arith.select %178, %179, %180 : vector<16x128xi1>, vector<16x128xf32>
      %182 = tpu.concatenate %176, %167, %181 in 1 : vector<16x128xf32>, vector<16x128xf32>, vector<16x128xf32> -> vector<16x384xf32>
      %183 = arith.truncf %182 : vector<16x384xf32> to vector<16x384xbf16>
      %cst_104 = arith.constant dense<0.000000e+00> : vector<16x128xf32>
      %184 = tpu.matmul %183, %168, %cst_104 {dimension_numbers = #tpu.dot_dimension_numbers<[1], [0], [0], [1], [0, 0, 1, 1], [], []>} : vector<16x384xbf16>, vector<384x128xbf16>, vector<16x128xf32> -> vector<16x128xf32>
      %185 = vector.broadcast %169 : vector<1x128xf32> to vector<16x128xf32>
      %186 = arith.mulf %184, %185 : vector<16x128xf32>
      %187 = vector.broadcast %170 : vector<1x128xf32> to vector<16x128xf32>
      %188 = arith.addf %186, %187 : vector<16x128xf32>
      %cst_105 = arith.constant 0.000000e+00 : f32
      %189 = vector.broadcast %cst_105 : f32 to vector<16x128xf32>
      %190 = arith.cmpf oge, %188, %189 : vector<16x128xf32>
      %cst_106 = arith.constant 0.00999999977 : f32
      %191 = vector.broadcast %cst_106 : f32 to vector<16x128xf32>
      %192 = arith.mulf %191, %188 : vector<16x128xf32>
      %193 = arith.select %190, %188, %192 : vector<16x128xi1>, vector<16x128xf32>
      %c0_107 = arith.constant 0 : index
      %c0_108 = arith.constant 0 : index
      %194 = vector.load %arg22[%c0_107, %c0_108] : memref<16x128xf32, #tpu.memory_space<vmem>>, vector<16x128xf32>
      tpu.vector_store %arg22[%c0_107, %c0_108], %193 {strides = array<i32>} : memref<16x128xf32, #tpu.memory_space<vmem>>, vector<16x128xf32>,
    } else {
    }
    %c0 = arith.constant 0 : index
    %c0_1 = arith.constant 0 : index
    %3 = vector.load %arg22[%c0, %c0_1] : memref<16x128xf32, #tpu.memory_space<vmem>>, vector<16x128xf32>
    %4 = arith.truncf %3 : vector<16x128xf32> to vector<16x128xbf16>
    %c0_2 = arith.constant 0 : index
    %c0_3 = arith.constant 0 : index
    %c0_4 = arith.constant 0 : index
    %5 = vector.load %arg19[%c0_2, %c0_3, %c0_4] : memref<1x4x128xf32, #tpu.memory_space<vmem>>, vector<1x4x128xf32>
    %6 = vector.shape_cast %5 : vector<1x4x128xf32> to vector<4x128xf32>
    %c0_5 = arith.constant 0 : index
    %c0_6 = arith.constant 0 : index
    %c0_7 = arith.constant 0 : index
    %7 = vector.load %arg20[%c0_5, %c0_6, %c0_7] : memref<1x4x128xf32, #tpu.memory_space<vmem>>, vector<1x4x128xf32>
    %8 = vector.shape_cast %7 : vector<1x4x128xf32> to vector<4x128xf32>
    %c0_8 = arith.constant 0 : index
    %c0_9 = arith.constant 0 : index
    %c0_10 = arith.constant 0 : index
    %9 = vector.load %arg13[%c0_8, %c0_9, %c0_10] : memref<1x128x128xbf16, #tpu.memory_space<vmem>>, vector<1x128x128xbf16>
    %10 = vector.shape_cast %9 : vector<1x128x128xbf16> to vector<128x128xbf16>
    %cst = arith.constant dense<0.000000e+00> : vector<16x128xf32>
    %11 = tpu.matmul %4, %10, %cst {dimension_numbers = #tpu.dot_dimension_numbers<[1], [0], [0], [1], [0, 0, 1, 1], [], []>} : vector<16x128xbf16>, vector<128x128xbf16>, vector<16x128xf32> -> vector<16x128xf32>
    %12 = vector.extract_strided_slice %6 {offsets = [0, 0], sizes = [1, 128], strides = [1, 1]} : vector<4x128xf32> to vector<1x128xf32>
    %13 = vector.extract_strided_slice %8 {offsets = [0, 0], sizes = [1, 128], strides = [1, 1]} : vector<4x128xf32> to vector<1x128xf32>
    %14 = vector.broadcast %12 : vector<1x128xf32> to vector<16x128xf32>
    %15 = arith.mulf %11, %14 : vector<16x128xf32>
    %16 = vector.broadcast %13 : vector<1x128xf32> to vector<16x128xf32>
    %17 = arith.addf %15, %16 : vector<16x128xf32>
    %cst_11 = arith.constant 0.000000e+00 : f32
    %18 = vector.broadcast %cst_11 : f32 to vector<16x128xf32>
    %19 = arith.cmpf oge, %17, %18 : vector<16x128xf32>
    %cst_12 = arith.constant 0.00999999977 : f32
    %20 = vector.broadcast %cst_12 : f32 to vector<16x128xf32>
    %21 = arith.mulf %20, %17 : vector<16x128xf32>
    %22 = arith.select %19, %17, %21 : vector<16x128xi1>, vector<16x128xf32>
    %c0_13 = arith.constant 0 : index
    %c0_14 = arith.constant 0 : index
    %c0_15 = arith.constant 0 : index
    %23 = vector.load %arg14[%c0_13, %c0_14, %c0_15] : memref<1x128x128xbf16, #tpu.memory_space<vmem>>, vector<1x128x128xbf16>
    %24 = vector.shape_cast %23 : vector<1x128x128xbf16> to vector<128x128xbf16>
    %cst_16 = arith.constant dense<0.000000e+00> : vector<16x128xf32>
    %25 = tpu.matmul %4, %24, %cst_16 {dimension_numbers = #tpu.dot_dimension_numbers<[1], [0], [0], [1], [0, 0, 1, 1], [], []>} : vector<16x128xbf16>, vector<128x128xbf16>, vector<16x128xf32> -> vector<16x128xf32>
    %26 = vector.extract_strided_slice %6 {offsets = [1, 0], sizes = [1, 128], strides = [1, 1]} : vector<4x128xf32> to vector<1x128xf32>
    %27 = vector.extract_strided_slice %8 {offsets = [1, 0], sizes = [1, 128], strides = [1, 1]} : vector<4x128xf32> to vector<1x128xf32>
    %28 = vector.broadcast %26 : vector<1x128xf32> to vector<16x128xf32>
    %29 = arith.mulf %25, %28 : vector<16x128xf32>
    %30 = vector.broadcast %27 : vector<1x128xf32> to vector<16x128xf32>
    %31 = arith.addf %29, %30 : vector<16x128xf32>
    %cst_17 = arith.constant 0.000000e+00 : f32
    %32 = vector.broadcast %cst_17 : f32 to vector<16x128xf32>
    %33 = arith.cmpf oge, %31, %32 : vector<16x128xf32>
    %cst_18 = arith.constant 0.00999999977 : f32
    %34 = vector.broadcast %cst_18 : f32 to vector<16x128xf32>
    %35 = arith.mulf %34, %31 : vector<16x128xf32>
    %36 = arith.select %33, %31, %35 : vector<16x128xi1>, vector<16x128xf32>
    %37 = arith.truncf %36 : vector<16x128xf32> to vector<16x128xbf16>
    %c0_19 = arith.constant 0 : index
    %c0_20 = arith.constant 0 : index
    %c0_21 = arith.constant 0 : index
    %38 = vector.load %arg15[%c0_19, %c0_20, %c0_21] : memref<1x128x128xbf16, #tpu.memory_space<vmem>>, vector<1x128x128xbf16>
    %39 = vector.shape_cast %38 : vector<1x128x128xbf16> to vector<128x128xbf16>
    %cst_22 = arith.constant dense<0.000000e+00> : vector<16x128xf32>
    %40 = tpu.matmul %37, %39, %cst_22 {dimension_numbers = #tpu.dot_dimension_numbers<[1], [0], [0], [1], [0, 0, 1, 1], [], []>} : vector<16x128xbf16>, vector<128x128xbf16>, vector<16x128xf32> -> vector<16x128xf32>
    %41 = vector.extract_strided_slice %6 {offsets = [2, 0], sizes = [1, 128], strides = [1, 1]} : vector<4x128xf32> to vector<1x128xf32>
    %42 = vector.extract_strided_slice %8 {offsets = [2, 0], sizes = [1, 128], strides = [1, 1]} : vector<4x128xf32> to vector<1x128xf32>
    %43 = vector.broadcast %41 : vector<1x128xf32> to vector<16x128xf32>
    %44 = arith.mulf %40, %43 : vector<16x128xf32>
    %45 = vector.broadcast %42 : vector<1x128xf32> to vector<16x128xf32>
    %46 = arith.addf %44, %45 : vector<16x128xf32>
    %cst_23 = arith.constant 0.000000e+00 : f32
    %47 = vector.broadcast %cst_23 : f32 to vector<16x128xf32>
    %48 = arith.cmpf oge, %46, %47 : vector<16x128xf32>
    %cst_24 = arith.constant 0.00999999977 : f32
    %49 = vector.broadcast %cst_24 : f32 to vector<16x128xf32>
    %50 = arith.mulf %49, %46 : vector<16x128xf32>
    %51 = arith.select %48, %46, %50 : vector<16x128xi1>, vector<16x128xf32>
    %c0_25 = arith.constant 0 : index
    %c0_26 = arith.constant 0 : index
    %c0_27 = arith.constant 0 : index
    %52 = vector.load %arg16[%c0_25, %c0_26, %c0_27] : memref<1x384x128xbf16, #tpu.memory_space<vmem>>, vector<1x384x128xbf16>
    %53 = vector.shape_cast %52 : vector<1x384x128xbf16> to vector<384x128xbf16>
    %54 = vector.extract_strided_slice %6 {offsets = [3, 0], sizes = [1, 128], strides = [1, 1]} : vector<4x128xf32> to vector<1x128xf32>
    %55 = vector.extract_strided_slice %8 {offsets = [3, 0], sizes = [1, 128], strides = [1, 1]} : vector<4x128xf32> to vector<1x128xf32>
    %56 = tpu.iota {dimensions = array<i32: 0>} : vector<16x128xi32>
    %c1_i32 = arith.constant 1 : i32
    %57 = vector.broadcast %c1_i32 : i32 to vector<16x128xi32>
    %58 = arith.cmpi sge, %56, %57 : vector<16x128xi32>
    %c1_i32_28 = arith.constant 1 : i32
    %59 = tpu.dynamic_rotate %51 by %c1_i32_28 dim 0 : vector<16x128xf32>, i32 -> vector<16x128xf32>
    %cst_29 = arith.constant 0.000000e+00 : f32
    %60 = vector.broadcast %cst_29 : f32 to vector<16x128xf32>
    %61 = arith.select %58, %59, %60 : vector<16x128xi1>, vector<16x128xf32>
    %c15_i32 = arith.constant 15 : i32
    %62 = vector.broadcast %c15_i32 : i32 to vector<16x128xi32>
    %63 = arith.cmpi slt, %56, %62 : vector<16x128xi32>
    %c15_i32_30 = arith.constant 15 : i32
    %64 = tpu.dynamic_rotate %51 by %c15_i32_30 dim 0 : vector<16x128xf32>, i32 -> vector<16x128xf32>
    %cst_31 = arith.constant 0.000000e+00 : f32
    %65 = vector.broadcast %cst_31 : f32 to vector<16x128xf32>
    %66 = arith.select %63, %64, %65 : vector<16x128xi1>, vector<16x128xf32>
    %67 = tpu.concatenate %61, %51, %66 in 1 : vector<16x128xf32>, vector<16x128xf32>, vector<16x128xf32> -> vector<16x384xf32>
    %68 = arith.truncf %67 : vector<16x384xf32> to vector<16x384xbf16>
    %cst_32 = arith.constant dense<0.000000e+00> : vector<16x128xf32>
    %69 = tpu.matmul %68, %53, %cst_32 {dimension_numbers = #tpu.dot_dimension_numbers<[1], [0], [0], [1], [0, 0, 1, 1], [], []>} : vector<16x384xbf16>, vector<384x128xbf16>, vector<16x128xf32> -> vector<16x128xf32>
    %70 = vector.broadcast %54 : vector<1x128xf32> to vector<16x128xf32>
    %71 = arith.mulf %69, %70 : vector<16x128xf32>
    %72 = vector.broadcast %55 : vector<1x128xf32> to vector<16x128xf32>
    %73 = arith.addf %71, %72 : vector<16x128xf32>
    %cst_33 = arith.constant 0.000000e+00 : f32
    %74 = vector.broadcast %cst_33 : f32 to vector<16x128xf32>
    %75 = arith.cmpf oge, %73, %74 : vector<16x128xf32>
    %cst_34 = arith.constant 0.00999999977 : f32
    %76 = vector.broadcast %cst_34 : f32 to vector<16x128xf32>
    %77 = arith.mulf %76, %73 : vector<16x128xf32>
    %78 = arith.select %75, %73, %77 : vector<16x128xi1>, vector<16x128xf32>
    %79 = arith.truncf %22 : vector<16x128xf32> to vector<16x128xbf16>
    %80 = arith.truncf %78 : vector<16x128xf32> to vector<16x128xbf16>
    %81 = tpu.concatenate %79, %80 in 1 : vector<16x128xbf16>, vector<16x128xbf16> -> vector<16x256xbf16>
    %c0_35 = arith.constant 0 : index
    %c0_36 = arith.constant 0 : index
    %c0_37 = arith.constant 0 : index
    %82 = vector.load %arg17[%c0_35, %c0_36, %c0_37] : memref<1x256x128xbf16, #tpu.memory_space<vmem>>, vector<1x256x128xbf16>
    %83 = vector.shape_cast %82 : vector<1x256x128xbf16> to vector<256x128xbf16>
    %cst_38 = arith.constant dense<0.000000e+00> : vector<16x128xf32>
    %84 = tpu.matmul %81, %83, %cst_38 {dimension_numbers = #tpu.dot_dimension_numbers<[1], [0], [0], [1], [0, 0, 1, 1], [], []>} : vector<16x256xbf16>, vector<256x128xbf16>, vector<16x128xf32> -> vector<16x128xf32>
    %c0_39 = arith.constant 0 : index
    %c0_40 = arith.constant 0 : index
    %c0_41 = arith.constant 0 : index
    %85 = vector.load %arg18[%c0_39, %c0_40, %c0_41] : memref<1x1x128xf32, #tpu.memory_space<vmem>>, vector<1x1x128xf32>
    %86 = vector.shape_cast %85 : vector<1x1x128xf32> to vector<1x128xf32>
    %87 = vector.broadcast %86 : vector<1x128xf32> to vector<16x128xf32>
    %88 = arith.addf %84, %87 : vector<16x128xf32>
    %cst_42 = arith.constant 2.000000e-01 : f32
    %89 = vector.broadcast %cst_42 : f32 to vector<16x128xf32>
    %90 = arith.mulf %88, %89 : vector<16x128xf32>
    %91 = arith.addf %90, %3 : vector<16x128xf32>
    %cst_43 = arith.constant 0.000000e+00 : f32
    %92 = vector.broadcast %cst_43 : f32 to vector<16x128xf32>
    %93 = arith.cmpf oge, %91, %92 : vector<16x128xf32>
    %cst_44 = arith.constant 0.00999999977 : f32
    %94 = vector.broadcast %cst_44 : f32 to vector<16x128xf32>
    %95 = arith.mulf %94, %91 : vector<16x128xf32>
    %96 = arith.select %93, %91, %95 : vector<16x128xi1>, vector<16x128xf32>
    %c0_45 = arith.constant 0 : index
    %c0_46 = arith.constant 0 : index
    %97 = vector.load %arg22[%c0_45, %c0_46] : memref<16x128xf32, #tpu.memory_space<vmem>>, vector<16x128xf32>
    tpu.vector_store %arg22[%c0_45, %c0_46], %96 {strides = array<i32>} : memref<16x128xf32, #tpu.memory_space<vmem>>, vector<16x128xf32>,
    %c4_i32 = arith.constant 4 : i32
    %98 = arith.cmpi eq, %arg1, %c4_i32 : i32
    %99 = arith.extui %98 : i1 to i32
    %c0_i32_47 = arith.constant 0 : i32
    %100 = arith.cmpi ne, %99, %c0_i32_47 : i32
    scf.if %100 {
      %c0_48 = arith.constant 0 : index
      %c0_49 = arith.constant 0 : index
      %101 = vector.load %arg22[%c0_48, %c0_49] : memref<16x128xf32, #tpu.memory_space<vmem>>, vector<16x128xf32>
      %c0_50 = arith.constant 0 : index
      %c0_51 = arith.constant 0 : index
      %c0_52 = arith.constant 0 : index
      %102 = vector.load %arg21[%c0_50, %c0_51, %c0_52] : memref<1x16x128xf32, #tpu.memory_space<vmem>>, vector<1x16x128xf32>
      %103 = vector.shape_cast %102 : vector<1x16x128xf32> to vector<16x128xf32>
      %104 = vector.shape_cast %101 : vector<16x128xf32> to vector<1x16x128xf32>
      tpu.vector_store %arg21[%c0_50, %c0_51, %c0_52], %104 {strides = array<i32>} : memref<1x16x128xf32, #tpu.memory_space<vmem>>, vector<1x16x128xf32>,
    } else {
    }
    return
  }
  func.func @transform_0(%arg0: i32, %arg1: i32) -> (i32, i32, i32) {
    %c0_i32 = arith.constant 0 : i32
    %c0_i32_0 = arith.constant 0 : i32
    %c0_i32_1 = arith.constant 0 : i32
    return %arg0, %c0_i32, %c0_i32_0 : i32, i32, i32
  }
  func.func @transform_1(%arg0: i32, %arg1: i32) -> (i32, i32, i32) {
    %c0_i32 = arith.constant 0 : i32
    %c0_i32_0 = arith.constant 0 : i32
    %c0_i32_1 = arith.constant 0 : i32
    return %arg0, %c0_i32, %c0_i32_0 : i32, i32, i32
  }
  func.func @transform_2(%arg0: i32, %arg1: i32) -> (i32, i32, i32) {
    %c0_i32 = arith.constant 0 : i32
    %c0_i32_0 = arith.constant 0 : i32
    %c0_i32_1 = arith.constant 0 : i32
    %c0_i32_2 = arith.constant 0 : i32
    return %c0_i32, %c0_i32_0, %c0_i32_1 : i32, i32, i32
  }
  func.func @transform_3(%arg0: i32, %arg1: i32) -> (i32, i32, i32) {
    %c0_i32 = arith.constant 0 : i32
    %c0_i32_0 = arith.constant 0 : i32
    %c0_i32_1 = arith.constant 0 : i32
    %c0_i32_2 = arith.constant 0 : i32
    return %c0_i32, %c0_i32_0, %c0_i32_1 : i32, i32, i32
  }
  func.func @transform_4(%arg0: i32, %arg1: i32) -> (i32, i32) {
    %c0_i32 = arith.constant 0 : i32
    %c0_i32_0 = arith.constant 0 : i32
    %c0_i32_1 = arith.constant 0 : i32
    return %c0_i32, %c0_i32_0 : i32, i32
  }
  func.func @transform_5(%arg0: i32, %arg1: i32) -> (i32, i32) {
    %c0_i32 = arith.constant 0 : i32
    %c0_i32_0 = arith.constant 0 : i32
    %c0_i32_1 = arith.constant 0 : i32
    return %c0_i32, %c0_i32_0 : i32, i32
  }
  func.func @transform_6(%arg0: i32, %arg1: i32) -> (i32, i32) {
    %c0_i32 = arith.constant 0 : i32
    %c0_i32_0 = arith.constant 0 : i32
    %c0_i32_1 = arith.constant 0 : i32
    return %c0_i32, %c0_i32_0 : i32, i32
  }
  func.func @transform_7(%arg0: i32, %arg1: i32) -> (i32, i32) {
    %c0_i32 = arith.constant 0 : i32
    %c0_i32_0 = arith.constant 0 : i32
    %c0_i32_1 = arith.constant 0 : i32
    return %c0_i32, %c0_i32_0 : i32, i32
  }
  func.func @transform_8(%arg0: i32, %arg1: i32) -> (i32, i32) {
    %c0_i32 = arith.constant 0 : i32
    %c0_i32_0 = arith.constant 0 : i32
    %c0_i32_1 = arith.constant 0 : i32
    return %c0_i32, %c0_i32_0 : i32, i32
  }
  func.func @transform_9(%arg0: i32, %arg1: i32) -> (i32, i32) {
    %c0_i32 = arith.constant 0 : i32
    %c0_i32_0 = arith.constant 0 : i32
    %c0_i32_1 = arith.constant 0 : i32
    return %c0_i32, %c0_i32_0 : i32, i32
  }
  func.func @transform_10(%arg0: i32, %arg1: i32) -> (i32, i32) {
    %c0_i32 = arith.constant 0 : i32
    %c0_i32_0 = arith.constant 0 : i32
    %c0_i32_1 = arith.constant 0 : i32
    return %c0_i32, %c0_i32_0 : i32, i32
  }
  func.func @transform_11(%arg0: i32, %arg1: i32) -> (i32, i32, i32) {
    %c0_i32 = arith.constant 0 : i32
    %c0_i32_0 = arith.constant 0 : i32
    %c0_i32_1 = arith.constant 0 : i32
    return %arg1, %c0_i32, %c0_i32_0 : i32, i32, i32
  }
  func.func @transform_12(%arg0: i32, %arg1: i32) -> (i32, i32, i32) {
    %c0_i32 = arith.constant 0 : i32
    %c0_i32_0 = arith.constant 0 : i32
    %c0_i32_1 = arith.constant 0 : i32
    return %arg1, %c0_i32, %c0_i32_0 : i32, i32, i32
  }
  func.func @transform_13(%arg0: i32, %arg1: i32) -> (i32, i32, i32) {
    %c0_i32 = arith.constant 0 : i32
    %c0_i32_0 = arith.constant 0 : i32
    %c0_i32_1 = arith.constant 0 : i32
    return %arg1, %c0_i32, %c0_i32_0 : i32, i32, i32
  }
  func.func @transform_14(%arg0: i32, %arg1: i32) -> (i32, i32, i32) {
    %c0_i32 = arith.constant 0 : i32
    %c0_i32_0 = arith.constant 0 : i32
    %c0_i32_1 = arith.constant 0 : i32
    return %arg1, %c0_i32, %c0_i32_0 : i32, i32, i32
  }
  func.func @transform_15(%arg0: i32, %arg1: i32) -> (i32, i32, i32) {
    %c0_i32 = arith.constant 0 : i32
    %c0_i32_0 = arith.constant 0 : i32
    %c0_i32_1 = arith.constant 0 : i32
    return %arg1, %c0_i32, %c0_i32_0 : i32, i32, i32
  }
  func.func @transform_16(%arg0: i32, %arg1: i32) -> (i32, i32, i32) {
    %c0_i32 = arith.constant 0 : i32
    %c0_i32_0 = arith.constant 0 : i32
    %c0_i32_1 = arith.constant 0 : i32
    return %arg1, %c0_i32, %c0_i32_0 : i32, i32, i32
  }
  func.func @transform_17(%arg0: i32, %arg1: i32) -> (i32, i32, i32) {
    %c0_i32 = arith.constant 0 : i32
    %c0_i32_0 = arith.constant 0 : i32
    %c0_i32_1 = arith.constant 0 : i32
    return %arg1, %c0_i32, %c0_i32_0 : i32, i32, i32
  }
  func.func @transform_18(%arg0: i32, %arg1: i32) -> (i32, i32, i32) {
    %c0_i32 = arith.constant 0 : i32
    %c0_i32_0 = arith.constant 0 : i32
    %c0_i32_1 = arith.constant 0 : i32
    return %arg1, %c0_i32, %c0_i32_0 : i32, i32, i32
  }
  func.func @transform_19(%arg0: i32, %arg1: i32) -> (i32, i32, i32) {
    %c0_i32 = arith.constant 0 : i32
    %c0_i32_0 = arith.constant 0 : i32
    %c0_i32_1 = arith.constant 0 : i32
    return %arg0, %c0_i32, %c0_i32_0 : i32, i32, i32
  }
}

</mosaic_0001>

<bundles_post_ra>
// kernel: up_forward.1
= control target key start
LH: loop header
LB: loop body
LE: loop exit
PB: predicated region body
PF: predicated region fallthrough
CT: control target
= control target key end

     0   :  { %s4365_s0 = inlined_call_operand.vmem [shape: bf16[2,16,32], index: 0, kind: input, shape index: {}]   ;;  %s4366_s1 = inlined_call_operand.vmem [shape: bf16[2,16,32], index: 1, kind: input, shape index: {}]   ;;  %s4367_s2 = inlined_call_operand.vmem [shape: bf16[2,32,64], index: 2, kind: input, shape index: {}]   ;;  %s4368_s3 = inlined_call_operand.vmem [shape: bf16[2,32,64], index: 3, kind: input, shape index: {}]   ;;  %s4369_s4 = inlined_call_operand.vmem [shape: f32[1,64], index: 4, kind: input, shape index: {}]   ;;  %s4370_s5 = inlined_call_operand.vmem [shape: bf16[192,128], index: 5, kind: input, shape index: {}]   ;;  %s4371_s6 = inlined_call_operand.hbm [shape: f32[1,128], index: 6, kind: input, shape index: {}]   ;;  %s4372_s7 = inlined_call_operand.hbm [shape: f32[1,128], index: 7, kind: input, shape index: {}]   ;;  %s4373_s8 = inlined_call_operand.vmem [shape: bf16[384,128], index: 8, kind: input, shape index: {}]   ;;  %s4374_s9 = inlined_call_operand.hbm [shape: f32[1,128], index: 9, kind: input, shape index: {}]   ;;  %s4375_s10 = inlined_call_operand.vmem [shape: f32[1,128], index: 10, kind: input, shape index: {}]   ;;  %s4376_s11 = inlined_call_operand.hbm [shape: bf16[5,128,128], index: 11, kind: input, shape index: {}]   ;;  %s4377_s12 = inlined_call_operand.hbm [shape: bf16[5,128,128], index: 12, kind: input, shape index: {}]   ;;  %s4378_s13 = inlined_call_operand.hbm [shape: bf16[5,128,128], index: 13, kind: input, shape index: {}]   ;;  %s4379_s14 = inlined_call_operand.hbm [shape: bf16[5,384,128], index: 14, kind: input, shape index: {}]   ;;  %s4380_s15 = inlined_call_operand.hbm [shape: bf16[5,256,128], index: 15, kind: input, shape index: {}]   ;;  %s4381_s16 = inlined_call_operand.hbm [shape: f32[5,1,128], index: 16, kind: input, shape index: {}]   ;;  %s4382_s17 = inlined_call_operand.vmem [shape: f32[5,4,128], index: 17, kind: input, shape index: {}]   ;;  %s4383_s18 = inlined_call_operand.vmem [shape: f32[5,4,128], index: 18, kind: input, shape index: {}]   ;;  %s4384_s19 = inlined_call_operand.vmem [shape: f32[2,16,128], index: 19, kind: output, shape index: {}]  }
   0x1   :  { %4402 = sst [smem:[#allocation32_spill]] %s4365_s0 }
   0x2   :  { %4403 = sst [smem:[#allocation33_spill]] %s4366_s1 }
   0x3   :  { %4404 = sst [smem:[#allocation34_spill]] %s4367_s2 }
   0x4   :  { %4405 = sst [smem:[#allocation35_spill]] %s4368_s3 }
   0x5   :  { %4406 = sst [smem:[#allocation36_spill]] %s4369_s4 }
   0x6   :  { %4407 = sst [smem:[#allocation37_spill]] %s4370_s5 }
   0x7   :  { %4408 = sst [smem:[#allocation38_spill]] %s4371_s6 }
   0x8   :  { %4409 = sst [smem:[#allocation39_spill]] %s4372_s7 }
   0x9   :  { %4410 = sst [smem:[#allocation40_spill]] %s4373_s8 }
   0xa   :  { %4411 = sst [smem:[#allocation41_spill]] %s4374_s9 }
   0xb   :  { %4412 = sst [smem:[#allocation42_spill]] %s4375_s10 }
   0xc   :  { %4413 = sst [smem:[#allocation43_spill]] %s4376_s11 }
   0xd   :  { %4414 = sst [smem:[#allocation44_spill]] %s4377_s12 }
   0xe   :  { %4415 = sst [smem:[#allocation45_spill]] %s4378_s13 }
   0xf   :  { %4416 = sst [smem:[#allocation46_spill]] %s4379_s14 }
  0x10   :  { %4417 = sst [smem:[#allocation47_spill]] %s4380_s15 }
  0x11   :  { %4418 = sst [smem:[#allocation48_spill]] %s4381_s16 }
  0x12   :  { %4419 = sst [smem:[#allocation49_spill]] %s4382_s17 }
  0x13   :  { %4420 = sst [smem:[#allocation50_spill]] %s4383_s18 }
  0x14   :  { %4421 = sst [smem:[#allocation51_spill]] %s4384_s19 }
  0x15   :  { %24 = vsyncpa [#allocation4], 0 }
  0x16   :  { %25 = vsyncpa [#allocation6], 0 }
  0x17   :  { %26 = vsyncpa [#allocation9], 0 }
  0x18   :  { %28 = vsyncpa [#allocation9 + $0x1], 0 }
  0x19   :  { %29 = vsyncpa [#allocation12], 0 }
  0x1a   :  { %31 = vsyncpa [#allocation12 + $0x1], 0 }
  0x1b   :  { %32 = vsyncpa [#allocation15], 0 }
  0x1c   :  { %34 = vsyncpa [#allocation15 + $0x1], 0  ;;  %s3810_s0 = smov 0   ;;  %s3812_s30 = smov 0  }
  0x1d   :  { %s3814_s20 = smov 0   ;;  %s3816_s21 = smov 0  }
  0x1e   :  { %s3818_s1 = smov 0   ;;  %s3820_s22 = smov 0  }
  0x1f   :  { %s3822_s2 = smov 0   ;;  %s3824_s23 = smov 0  }
  0x20 LB: > { %4422 = sst [smem:[#allocation22_spill]] %s3676_s30  ;;  %s4387_s24 = sadd.s32 4294967295, %s3700_s23   ;;  %s3700_s23 = sphi %s3824_s23, %s40_s23   ;;  %s3696_s2 = sphi %s3822_s2, %s4473_s2   ;;  %s3692_s22 = sphi %s3820_s22, %s4472_s22   ;;  %s3688_s1 = sphi %s3818_s1, %s4471_s1   ;;  %s3684_s21 = sphi %s3816_s21, %s4470_s21   ;;  %s3680_s20 = sphi %s3814_s20, %s4469_s20   ;;  %s3676_s30 = sphi %s3812_s30, %s4468_s30   ;;  %s3672_s0 = sphi %s3810_s0, %s4467_s0  }
  0x21   : > { %4423 = sst [smem:[#allocation23_spill]] %s3680_s20  ;;  %p307_p0 = scmp.ne.s32.totalorder %s3680_s20, %s3676_s30 }
  0x22   : > { %4424 = sst [smem:[#allocation24_spill]] %s3684_s21  ;;  %p308_p1 = scmp.eq.s32.totalorder %s3700_s23, 0 }
  0x23   : > { %4425 = sst [smem:[#allocation25_spill]] %s3688_s1  ;;  %p313_p2 = scmp.ne.s32.totalorder %s3676_s30, %s3672_s0 }
  0x24   : > { %4426 = sst [smem:[#allocation26_spill]] %s3692_s22  ;;  %p3856_p3 = scmp.eq.s32.totalorder %s4387_s24, 0 }
  0x25   : > { %4427 = sst [smem:[#allocation27_spill]] %s3696_s2  ;;  %p3860_p4 = por %p308_p1, %p307_p0 }
  0x26   : > { %p2582_p5 = scmp.ge.s32.totalorder %s3700_s23, 1  ;;  %p3867_p6 = por %p3856_p3, %p313_p2 }
  0x27   : > { %p532_p7 = scmp.lt.s32.totalorder %s3700_s23, 11  ;;  %s4432_s7 = sld [smem:[#allocation39_spill]] }
  0x28   : > { %s4430_s27 = scalar_select %p3867_p6, 1, 0 }
  0x29   : > { %p3875_p8 = pnand %p2582_p5, %p532_p7  ;;  %s3702_s25 = smov [#allocation5]  }
  0x2a   : > { %4431 = sst [smem:[#allocation28_spill]] %s4430_s27  ;;  %s570_s10 = sshll.u32 %s3702_s25, 4  ;;  %s571_s10 = int_to_ptr.vmem [resolvable:$true] %s570_s10 }
  0x2b   : > { %p3229_p9 = pneg %p3875_p8  ;;  %p3261_p10 = scmp.lt.s32.totalorder %s3700_s23, 10 }
  0x2c   : > { %s52_s25 = sadd.s32 1, %s3696_s2  ;;  %s3899_s8 = sand.u32 1, %s3700_s23  }
  0x2d   : > { %s568_s0 = sshll.u32 %s4432_s7, 4  ;;  %p3884_p11 = pnand %p3229_p9, %p3856_p3  ;;  %s569_s0 = int_to_ptr.hbm [resolvable:$true] %s568_s0 }
  0x2e   : > { %p3890_p12 = pnand %p3261_p10, %p3860_p4  ;;  %s49_s7 = sadd.s32 1, %s3692_s22 }
  0x2f   : > { %3235 = dma.hbm_to_vmem [thread:$0]  (!%p3884_p11), %s569_s0, 16, %s571_s10, [#allocation6]  }
  0x30   : > { %p50_p13 = scmp.ge.s32.totalorder %s49_s7, 5  ;;  %s3902_s4 = sand.u32 1, %s3680_s20  }
  0x31   : > { %s3910_s5 = sshll.u32 %s3902_s4, 6  ;;  %s3913_s10 = sshll.u32 %s3692_s22, 6 }
  0x32   : > { %s4475_s7 = smov (%p50_p13, %s49_s7), 0  ;;  %s4477_s25 = smov (!%p50_p13, %s52_s25), %s3696_s2 }
  0x33   : > { %4436 = sst [smem:[#allocation29_spill]] %s4475_s7  ;;  %s297_s26 = ssub.s32 %s3692_s22, %s4475_s7 }
  0x34   : > { %p54_p0 = scmp.ge.s32.totalorder %s4477_s25, 2  ;;  %p298_p1 = scmp.eq.s32.totalorder %s297_s26, 0 }
  0x35   : > { %s4438_s0 = sadd.s32 1, %s3680_s20  ;;  %s4440_s11 = sld [smem:[#allocation43_spill]] }
  0x36   : > { %s4479_s25 = smov (%p54_p0, %s4477_s25), 0  ;;  %s619_s19 = scalar_lea.vmem [#allocation8], %s3910_s5 }
  0x37   : > { %4437 = sst [smem:[#allocation30_spill]] %s4479_s25  ;;  %s627_s21 = sshll.u32 %s619_s19, 4  ;;  %s628_s21 = int_to_ptr.vmem [resolvable:$true] %s627_s21 }
  0x38   : > { %s3920_s18 = scalar_select %p298_p1, %s3680_s20, %s4438_s0  }
  0x39   : > { %s4396_s1 = scalar_lea.sflag [#allocation9], %s3899_s8  ;;  %s3703_s27 = smov 64  }
  0x3a   : > { %4439 = sst [smem:[#allocation31_spill]] %s3920_s18  ;;  %s3704_s25 = smov 4  }
  0x3b   : > { %s624_s7 = scalar_lea.hbm %s4440_s11, %s3913_s10  ;;  %s4441_s13 = sld [smem:[#allocation45_spill]] }
  0x3c   : > { %s625_s26 = sshll.u32 %s624_s7, 4  ;;  %s663_s7 = scalar_lea.vmem [#allocation11], %s3910_s5  ;;  %s626_s26 = int_to_ptr.hbm [resolvable:$true] %s625_s26 }
  0x3d   : > { %3242 = dma.hbm_to_vmem [thread:$0]  (!%p3890_p12), %s626_s26, 1024, %s628_s21, %s4396_s1, %s3703_s27, %s3703_s27, %s3704_s25  }
  0x3e   : > { %s671_s11 = sshll.u32 %s663_s7, 4  ;;  %s4399_s18 = scalar_lea.sflag [#allocation12], %s3899_s8  ;;  %s672_s11 = int_to_ptr.vmem [resolvable:$true] %s671_s11 }
  0x3f   : > { %s2597_s21 = sshll.u32 %s3902_s4, 7  ;;  %s3088_s26 = sshll.u32 %s3692_s22, 7 }
  0x40   : > { %s4442_s15 = sld [smem:[#allocation47_spill]]  ;;  %s4398_s20 = scalar_lea.sflag [#allocation15], %s3899_s8 }
  0x41   : > { %s668_s0 = scalar_lea.hbm %s4441_s13, %s3913_s10  ;;  %s4443_s6 = sld [smem:[#allocation38_spill]] }
  0x42   : > { %s669_s19 = sshll.u32 %s668_s0, 4  ;;  %s707_s0 = scalar_lea.vmem [#allocation14], %s2597_s21  ;;  %s670_s19 = int_to_ptr.hbm [resolvable:$true] %s669_s19 }
  0x43   : > { %3248 = dma.hbm_to_vmem [thread:$0]  (!%p3890_p12), %s670_s19, 1024, %s672_s11, %s4399_s18, %s3703_s27, %s3703_s27, %s3704_s25  }
  0x44   : > { %s715_s13 = sshll.u32 %s707_s0, 4  ;;  %s3705_s21 = smov [#allocation3]   ;;  %s716_s13 = int_to_ptr.vmem [resolvable:$true] %s715_s13 }
  0x45   : > { %s4444_s9 = sld [smem:[#allocation41_spill]]  ;;  %s641_s17 = scalar_lea.vmem [#allocation10], %s3910_s5 }
  0x46   : > { %s712_s2 = scalar_lea.hbm %s4442_s15, %s3088_s26  ;;  %s558_s26 = sshll.u32 %s3705_s21, 4  ;;  %s559_s26 = int_to_ptr.vmem [resolvable:$true] %s558_s26 }
  0x47   : > { %s713_s7 = sshll.u32 %s712_s2, 4  ;;  %s556_s1 = sshll.u32 %s4443_s6, 4  ;;  %s714_s7 = int_to_ptr.hbm [resolvable:$true] %s713_s7  ;;  %s557_s1 = int_to_ptr.hbm [resolvable:$true] %s556_s1 }
  0x48   : > { %3254 = dma.hbm_to_vmem [thread:$0]  (!%p3890_p12), %s714_s7, 2048, %s716_s13, %s4398_s20, %s3703_s27, %s3703_s27, %s3704_s25  }
  0x49   : > { %3232 = dma.hbm_to_vmem [thread:$0]  (!%p3884_p11), %s557_s1, 16, %s559_s26, [#allocation4]  }
  0x4a   : > { %s3706_s13 = smov [#allocation7]   ;;  %s4445_s12 = sld [smem:[#allocation44_spill]] }
  0x4b   : > { %s583_s0 = sshll.u32 %s4444_s9, 4  ;;  %s585_s7 = sshll.u32 %s3706_s13, 4  ;;  %s584_s0 = int_to_ptr.hbm [resolvable:$true] %s583_s0  ;;  %s586_s7 = int_to_ptr.vmem [resolvable:$true] %s585_s7 }
  0x4c   : > { %3238 = dma.hbm_to_vmem [thread:$0]  (!%p3884_p11), %s584_s0, 16, %s586_s7, [#allocation6]  }
  0x4d   : > { %s649_s2 = sshll.u32 %s641_s17, 4  ;;  %s3202_s18 = smul.u32 192, %s3902_s4  ;;  %s650_s2 = int_to_ptr.vmem [resolvable:$true] %s649_s2 }
  0x4e   : > { %s4446_s1 = scalar_lea.sflag [#allocation9], %s3899_s8  ;;  %s4447_s14 = sld [smem:[#allocation46_spill]] }
  0x4f   : > { %s4448_s16 = sld [smem:[#allocation48_spill]] }
  0x50   : > { %s646_s20 = scalar_lea.hbm %s4445_s12, %s3913_s10  ;;  %s3203_s10 = smul.u32 192, %s3692_s22 }
  0x51   : > { %s647_s21 = sshll.u32 %s646_s20, 4  ;;  %s685_s20 = scalar_lea.vmem [#allocation13], %s3202_s18  ;;  %s648_s21 = int_to_ptr.hbm [resolvable:$true] %s647_s21 }
  0x52   : > { %3245 = dma.hbm_to_vmem [thread:$0]  (!%p3890_p12), %s648_s21, 1024, %s650_s2, %s4446_s1, %s3703_s27, %s3703_s27, %s3704_s25  }
  0x53   : > { %s693_s28 = sshll.u32 %s685_s20, 4  ;;  %s4449_s21 = scalar_lea.sflag [#allocation12], %s3899_s8  ;;  %s694_s28 = int_to_ptr.vmem [resolvable:$true] %s693_s28 }
  0x54   : > { %s690_s13 = scalar_lea.hbm %s4447_s14, %s3203_s10  ;;  %s728_s18 = scalar_lea.vmem [#allocation16], %s3902_s4 }
  0x55   : > { %s691_s5 = sshll.u32 %s690_s13, 4  ;;  %s731_s19 = scalar_lea.hbm %s4448_s16, %s3692_s22  ;;  %s692_s5 = int_to_ptr.hbm [resolvable:$true] %s691_s5 }
  0x56   : > { %s733_s17 = sshll.u32 %s731_s19, 4  ;;  %s735_s2 = sshll.u32 %s728_s18, 4  ;;  %s734_s17 = int_to_ptr.hbm [resolvable:$true] %s733_s17  ;;  %s736_s2 = int_to_ptr.vmem [resolvable:$true] %s735_s2 }
  0x57   : > { %3251 = dma.hbm_to_vmem [thread:$0]  (!%p3890_p12), %s692_s5, 3072, %s694_s28, %s4449_s21, %s3703_s27, %s3703_s27, %s3704_s25  }
  0x58   : > { %s4450_s1 = scalar_lea.sflag [#allocation15], %s3899_s8  ;;  %758 = sbr.rel (%p3875_p8) target bundleno = 1344 (0x540), region = 96 }
  0x59   : > { %3257 = dma.hbm_to_vmem [thread:$0]  (!%p3890_p12), %s734_s17, 16, %s736_s2, %s4450_s1  }
  0x5d   : > { %3651 = dma.done.wait (%p3856_p3), [#allocation4], 16  }
  0x5e   : > { %3653 = vsyncadd (%p3856_p3), [#allocation4], 4294967280 }
  0x5f   : > { %3655 = dma.done.wait (%p3856_p3), [#allocation6], 32  }
  0x60   : > { %3657 = vsyncadd (%p3856_p3), [#allocation6], 4294967264  ;;  %s4451_s4 = sadd.s32 4294967295, %s3700_s23   ;;  %s4017_s29 = sand.u32 1, %s3676_s30  }
  0x61   : > { %s775_s27 = sand.u32 1, %s4451_s4   ;;  %s2604_s24 = sshll.u32 %s4017_s29, 6 }
  0x62   : > { %s776_s25 = scalar_lea.sflag [#allocation9], %s775_s27  ;;  %s4020_s10 = scalar_lea.vmem [#allocation8], %s2604_s24 }
  0x63   : > { %3659 = dma.done.wait (%p3867_p6), %s776_s25, 2048  }
  0x64   : > { %3661 = vsyncadd (%p3867_p6), %s776_s25, 4294965248  ;;  %s4026_s3 = scalar_lea.vmem [#allocation10], %s2604_s24  ;;  %s796_s20 = scalar_lea.sflag [#allocation12], %s775_s27 }
  0x65   : > { %s4028_s28 = scalar_lea.vmem [#allocation11], %s2604_s24 }
  0x66   : > { %3663 = dma.done.wait (%p3867_p6), %s796_s20, 4096  }
  0x67   : > { %3665 = vsyncadd (%p3867_p6), %s796_s20, 4294963200  ;;  %s3204_s26 = smul.u32 192, %s4017_s29  ;;  %s2607_s0 = sshll.u32 %s4017_s29, 7 }
  0x68   : > { %s816_s5 = scalar_lea.sflag [#allocation15], %s775_s27  ;;  %s4038_s7 = scalar_lea.vmem [#allocation14], %s2607_s0 }
  0x69   : > { %s4036_s13 = scalar_lea.vmem [#allocation13], %s3204_s26 }
  0x6a   : > { %3667 = dma.done.wait (%p3867_p6), %s816_s5, 2064  }
  0x6b   : > { %3669 = vsyncadd (%p3867_p6), %s816_s5, 4294965232  ;;  %s4453_s11 = sld [smem:[#allocation25_spill]]  ;;  %s828_s1 = scalar_lea.vmem [#allocation16], %s4017_s29 }
  0x6c   : > { %s4454_s19 = sld [smem:[#allocation24_spill]] }
  0x6d   : > { %s4455_s4 = sld [smem:[#allocation32_spill]] }
  0x6e   : > { %s4456_s20 = sld [smem:[#allocation33_spill]] }
  0x6f   : > { %s4457_s6 = sld [smem:[#allocation51_spill]] }
  0x70   : > { %s4458_s15 = sld [smem:[#allocation49_spill]] }
  0x71   : > { %p926_p2 = scmp.lt.s32.totalorder %s4453_s11, 1  ;;  %s4459_s30 = sld [smem:[#allocation50_spill]] }
  0x72   : > { %p936_p3 = scmp.lt.s32.totalorder %s4454_s19, 4  ;;  %p2616_p4 = scmp.ne.s32.totalorder %s4454_s19, 0 }
  0x73   : > { %s4481_s11 = smov (!%p926_p2, %s4453_s11), 1  ;;  %s4461_s24 = sld [smem:[#allocation34_spill]] (!%p2616_p4) }
  0x74   : > { %s937_s17 = scalar_select %p936_p3, %s4454_s19, 4 }
  0x75   : > { %s3089_s21 = sshll.u32 %s4481_s11, 3  ;;  %s3091_s18 = sshll.u32 %s4481_s11, 4 }
  0x76   : > { %s930_s27 = scalar_lea.vmem %s4455_s4, %s3089_s21  ;;  %s935_s8 = scalar_lea.vmem %s4456_s20, %s3089_s21 }
  0x77   : > { %s2612_s26 = sshll.u32 %s937_s17, 2  ;;  %s4057_s9 = scalar_lea.vmem %s4457_s6, %s3091_s18 }
  0x78   : > { %s4062_s16 = scalar_lea.vmem %s4458_s15, %s2612_s26  ;;  %s4067_s2 = scalar_lea.vmem %s4459_s30, %s2612_s26 }
  0x79   : > { %953 = sbr.rel (%p2616_p4) target bundleno = 702 (0x2be), region = 136  ;;  %s4460_s4 = sld [smem:[#allocation35_spill]] (!%p2616_p4) }
  0x7a   : > { %s4462_s6 = sld [smem:[#allocation37_spill]] (!%p2616_p4)  ;;  %s3707_s22 = smov (!%p2616_p4), 64  }
  0x7b   : > { %s4463_s12 = sld [smem:[#allocation36_spill]] (!%p2616_p4) }
  0x7c   : > { %s4464_s26 = sld [smem:[#allocation40_spill]] (!%p2616_p4) }
  0x7d   : > { %s4465_s0 = sld [smem:[#allocation42_spill]] (!%p2616_p4) }
  0x7e   : > { %v3095_v1 = vld [vmem:[%s4461_s24 + $0x8] sm:$0xff]  ;;  %v3099_v3 = vld [vmem:[%s4461_s24 + $0x18] sm:$0xff]  ;;  %v3094_v5 = vld [vmem:[%s4461_s24] sm:$0xff]  ;;  %vm983_vm0 = vcmask 261120   ;;  %v1097_v16 = vlaneseq  ;;  %vm1186_vm6 = vcmask 523264   ;;  %vm3708_vm10 = vmmov 1  }
  0x7f   : > { %v3097_v0 = vld [vmem:[%s4460_s4 + $0x8] sm:$0xff]  ;;  %v3101_v2 = vld [vmem:[%s4460_s4 + $0x18] sm:$0xff]  ;;  %1027 = vmatpush.bf16.msra.mxu1 %v3095_v1  ;;  %v3096_v4 = vld [vmem:[%s4460_s4] sm:$0xff]  ;;  %1089 = vmatpush.bf16.msra.mxu3 %v3099_v3 }
  0x80   : > { %993 = vmatpush.bf16.msra.mxu0 %v3097_v0  ;;  %v3100_v6 = vld [vmem:[%s4460_s4 + $0x10] sm:$0xff]  ;;  %1063 = vmatpush.bf16.msra.mxu2 %v3101_v2  ;;  %v3093_v8 = vld [vmem:[%s935_s8] sm:$0xff]  ;;  %v3113_v10 = vld [vmem:[%s4462_s6 + $0x58] sm:$0xff]  ;;  %v4116_v18 = vshrl.u32 %v1097_v16, 7 }
  0x81   : > { %v3098_v7 = vld [vmem:[%s4461_s24 + $0x10] sm:$0xff]  ;;  %v3092_v9 = vld [vmem:[%s930_s27] sm:$0xff]  ;;  %v3111_v12 = vld [vmem:[%s4462_s6 + $0x48] sm:$0xff] }
  0x82   : > { %v3112_v11 = vld [vmem:[%s4462_s6 + $0x50] sm:$0xff]  ;;  %v3110_v13 = vld [vmem:[%s4462_s6 + $0x40] sm:$0xff]  ;;  %v3109_v14 = vld [vmem:[%s4462_s6 + $0x38] sm:$0xff]  ;;  %v1104_v22 = vand.u32 1, %v4116_v18  ;;  %v4123_v25 = vadd.s32 8, %v4116_v18  ;;  %vm1173_vm4 = vcmp.lt.s32.totalorder %v4116_v18, 7 }
  0x83   : > { %1028 = vmatpush.bf16.msra.mxu1 %v3094_v5  ;;  %1090 = vmatpush.bf16.msra.mxu3 %v3098_v7  ;;  %v3108_v15 = vld [vmem:[%s4462_s6 + $0x30] sm:$0xff]  ;;  %v3107_v17 = vld [vmem:[%s4462_s6 + $0x28] sm:$0xff]  ;;  %v3106_v21 = vld [vmem:[%s4462_s6 + $0x20] sm:$0xff]  ;;  %vm1164_vm5 = vcmp.lt.s32.totalorder %v4116_v18, 1  ;;  %vm1160_vm7 = vcmp.ge.s32.totalorder %v4116_v18, 1 }
  0x84   : > { %994 = vmatpush.bf16.msra.mxu0 %v3096_v4  ;;  %1064 = vmatpush.bf16.msra.mxu2 %v3100_v6  ;;  %v3105_v28 = vld [vmem:[%s4462_s6 + $0x18] sm:$0xff]  ;;  %vm1124_vm1 = vcmp.eq.s32.totalorder %v1104_v22, 0  ;;  %v1111_v29 = vand.u32 1, %v4123_v25  ;;  %v3342_v30 = vld [vmem:[%s4463_s12] ss:$0 sm:$0xff]  ;;  %v3104_v34 = vld [vmem:[%s4462_s6 + $0x10] sm:$0xff] }
  0x85   : > { %v3103_v40 = vld [vmem:[%s4462_s6 + $0x8] sm:$0xff]  ;;  %vm1170_vm3 = vcmp.lt.s32.totalorder %v4123_v25, 15  ;;  %v3102_v54 = vld [vmem:[%s4462_s6] sm:$0xff]  ;;  %v3129_v55 = vld [vmem:[%s4464_s26 + $0x78] sm:$0xff] }
  0x86   : > { %2642 = vmatmul.msk.bf16.vlgmr.msra.gmra.mxu1 %vm983_vm0, %v3092_v9  ;;  %2668 = vmatmul.msk.bf16.vlgmr.msra.gmra.mxu3 %vm983_vm0, %v3092_v9  ;;  %vm1125_vm2 = vcmp.eq.s32.totalorder %v1111_v29, 0  ;;  %v3121_v56 = vld [vmem:[%s4464_s26 + $0x38] sm:$0xff]  ;;  %v3128_v58 = vld [vmem:[%s4464_s26 + $0x70] sm:$0xff]  ;;  %v3127_v61 = vld [vmem:[%s4464_s26 + $0x68] sm:$0xff] }
  0x87   : > { %2629 = vmatmul.msk.bf16.vlgmr.msra.gmra.mxu0 %vm983_vm0, %v3093_v8  ;;  %2659 = vmatmul.msk.bf16.vlgmr.msra.gmra.mxu2 %vm983_vm0, %v3093_v8  ;;  %v3137_v57 = vld [vmem:[%s4464_s26 + $0xb8] sm:$0xff]  ;;  %v3120_v59 = vld [vmem:[%s4464_s26 + $0x30] sm:$0xff]  ;;  %v3119_v5 = vld [vmem:[%s4464_s26 + $0x28] sm:$0xff] }
  0x88   : > { %1284 = vmatpush.bf16.msrb.mxu1 %v3113_v10  ;;  %1266 = vmatpush.bf16.msrb.mxu0 %v3109_v14  ;;  %v3136_v60 = vld [vmem:[%s4464_s26 + $0xb0] sm:$0xff]  ;;  %v3135_v6 = vld [vmem:[%s4464_s26 + $0xa8] sm:$0xff]  ;;  %v3126_v7 = vld [vmem:[%s4464_s26 + $0x60] sm:$0xff] }
  0x89   : > { %1533 = vmatpush.bf16.msrb.mxu3 %v3129_v55  ;;  %1519 = vmatpush.bf16.msrb.mxu2 %v3121_v56  ;;  %v3118_v8 = vld [vmem:[%s4464_s26 + $0x20] sm:$0xff]  ;;  %v3125_v10 = vld [vmem:[%s4464_s26 + $0x58] sm:$0xff]  ;;  %v3116_v14 = vld [vmem:[%s4464_s26 + $0x10] sm:$0xff] }
  0x8a   : > { %v3134_v9 = vld [vmem:[%s4464_s26 + $0xa0] sm:$0xff]  ;;  %v3123_v16 = vld [vmem:[%s4464_s26 + $0x48] sm:$0xff]  ;;  %vm2814_vm11 = vmpackc.low %vm3708_vm10, %vm1160_vm7 }
  0x8b   : > { %v3130_v22 = vld [vmem:[%s4464_s26 + $0x80] sm:$0xff]  ;;  %vm2817_vm12 = vmpackc.low %vm1170_vm3, %vm3708_vm10  ;;  %v3345_v55 = vld [vmem:[#allocation7] ss:$0 sm:$0xff] }
  0x8c   : > { %1285 = vmatpush.bf16.msrb.mxu1 %v3112_v11  ;;  %1267 = vmatpush.bf16.msrb.mxu0 %v3108_v15  ;;  %v3117_v11 = vld [vmem:[%s4464_s26 + $0x18] sm:$0xff]  ;;  %v3132_v15 = vld [vmem:[%s4464_s26 + $0x90] sm:$0xff]  ;;  %v3346_v25 = vld [vmem:[%s4465_s0] ss:$0 sm:$0xff] }
  0x8d   : > { %1534 = vmatpush.bf16.msrb.mxu3 %v3128_v58  ;;  %1520 = vmatpush.bf16.msrb.mxu2 %v3120_v59 }
  0x90   : > { %1286 = vmatpush.bf16.msrb.mxu1 %v3111_v12  ;;  %1268 = vmatpush.bf16.msrb.mxu0 %v3107_v17  ;;  %v3133_v12 = vld [vmem:[%s4464_s26 + $0x98] sm:$0xff]  ;;  %v3115_v17 = vld [vmem:[%s4464_s26 + $0x8] sm:$0xff] }
  0x91   : > { %1535 = vmatpush.bf16.msrb.mxu3 %v3127_v61  ;;  %1521 = vmatpush.bf16.msrb.mxu2 %v3119_v5 }
  0x94   : > { %1287 = vmatpush.bf16.msrb.mxu1 %v3110_v13  ;;  %1269 = vmatpush.bf16.msrb.mxu0 %v3106_v21  ;;  %v3124_v13 = vld [vmem:[%s4464_s26 + $0x50] sm:$0xff]  ;;  %v3114_v21 = vld [vmem:[%s4464_s26] sm:$0xff] }
  0x95   : > { %1536 = vmatpush.bf16.msrb.mxu3 %v3126_v7  ;;  %1522 = vmatpush.bf16.msrb.mxu2 %v3118_v8 }
  0x98   : > { %1270 = vmatpush.bf16.msrb.mxu0 %v3105_v28  ;;  %1547 = vmatpush.bf16.msra.mxu1 %v3137_v57  ;;  %v3344_v28 = vld [vmem:[#allocation5] ss:$0 sm:$0xff] }
  0x99   : > { %1537 = vmatpush.bf16.msrb.mxu3 %v3125_v10  ;;  %1523 = vmatpush.bf16.msrb.mxu2 %v3117_v11 }
  0x9c   : > { %1271 = vmatpush.bf16.msrb.mxu0 %v3104_v34  ;;  %1548 = vmatpush.bf16.msra.mxu1 %v3136_v60 }
  0x9d   : > { %1538 = vmatpush.bf16.msrb.mxu3 %v3124_v13  ;;  %1524 = vmatpush.bf16.msrb.mxu2 %v3116_v14 }
  0xa0   : > { %1272 = vmatpush.bf16.msrb.mxu0 %v3103_v40  ;;  %1549 = vmatpush.bf16.msra.mxu1 %v3135_v6 }
  0xa1   : > { %1539 = vmatpush.bf16.msrb.mxu3 %v3123_v16  ;;  %1525 = vmatpush.bf16.msrb.mxu2 %v3115_v17 }
  0xa4   : > { %1273 = vmatpush.bf16.msrb.mxu0 %v3102_v54  ;;  %1550 = vmatpush.bf16.msra.mxu1 %v3134_v9 }
  0xa5   : > { %1526 = vmatpush.bf16.msrb.mxu2 %v3114_v21 }
  0xa8   : > { %1551 = vmatpush.bf16.msra.mxu1 %v3133_v12 }
  0xac   : > { %1552 = vmatpush.bf16.msra.mxu1 %v3132_v15 }
 0x103   : > { %v1030_v20 = vpop.f32.mrf.mxu1 }
 0x104   : > { %v996_v19 = vpop.f32.mrf.mxu0 }
 0x105   : > { %v1031_v26 = vadd.f32 %v1030_v20, %v996_v19  ;;  %v3131_v19 = vld [vmem:[%s4464_s26 + $0x88] sm:$0xff]  ;;  %v3122_v20 = vld [vmem:[%s4464_s26 + $0x40] sm:$0xff] }
 0x106   : > { %1553 = vmatpush.bf16.msra.mxu1 %v3131_v19  ;;  %1540 = vmatpush.bf16.msrb.mxu3 %v3122_v20 }
 0x109   : > { %v1092_v24 = vpop.f32.mrf.mxu3 }
 0x10a   : > { %v1066_v23 = vpop.f32.mrf.mxu2  ;;  %1554 = vmatpush.bf16.msra.mxu1 %v3130_v22 }
 0x10b   : > { %v1093_v27 = vadd.f32 %v1092_v24, %v1066_v23  ;;  %v1032_v33 = vpop.f32.mrf.mxu1  ;;  %v3343_v24 = vld [vmem:[#allocation3] ss:$0 sm:$0xff] }
 0x10c   : > { %v998_v32 = vpop.f32.mrf.mxu0 }
 0x10d   : > { %v1126_v31 = vsel %vm1124_vm1, %v1031_v26, %v1093_v27  ;;  %v1033_v37 = vadd.f32 %v1032_v33, %v998_v32 }
 0x10e   : > { %v1132_v39 = vadd.f32 %v3342_v30, %v1126_v31 }
 0x110   : > { %v1162_v43 = vrot.slane %v1132_v39, 7  ;;  %v1171_v47 = vrot.slane %v1132_v39, 1 }
 0x111   : > { %v1094_v36 = vpop.f32.mrf.mxu3 }
 0x112   : > { %v1068_v35 = vpop.f32.mrf.mxu2 }
 0x113   : > { %v1095_v38 = vadd.f32 %v1094_v36, %v1068_v35 }
 0x115   : > { %v1127_v41 = vsel %vm1125_vm2, %v1033_v37, %v1095_v38 }
 0x116   : > { %v1133_v42 = vadd.f32 %v3342_v30, %v1127_v41 }
 0x118   : > { %v1163_v44 = vrot.slane %v1133_v42, 7  ;;  %v1172_v45 = vrot.slane %v1133_v42, 1  ;;  %v3337_v46 = vpack.i.bf16 %v1133_v42, %v1132_v39 }
 0x11a   : > { %3338 = vrot.lane.b32.xlu0 %v3337_v46, %s3707_s22  ;;  %v1174_v48 = vsel %vm1173_vm4, %v1171_v47, %v1172_v45  ;;  %v1175_v49 = vsel %vm1173_vm4, %v1172_v45, %v1171_v47  ;;  %v1165_v50 = vsel %vm1164_vm5, %v1162_v43, %v1163_v44  ;;  %v1166_v51 = vsel %vm1164_vm5, %v1163_v44, %v1162_v43 }
 0x11b   : > { %v1177_v52 = vsel %vm1170_vm3, %v1175_v49, 0.0  ;;  %v1167_v1 = vsel %vm1160_vm7, %v1166_v51, 0.0 }
 0x11c   : > { %v1190_v53 = vpack.c.bf16 %v1177_v52, %v1174_v48 }
 0x11e   : > { %2717 = vmatmul.msk.bf16.vlgmr.msrb.gmra.mxu1 %vm1186_vm6, %v1190_v53 }
 0x18c   : > { %v3339_v62 = vpop.permute.xlu0 %3338 }
 0x18d   : > { %v3341_v63 = vunpack.i.h.bf16 %v3339_v62  ;;  %v3340_v0 = vunpack.i.l.bf16 %v3339_v62 }
 0x18f   : > { %v1187_v2 = vsel %vm1186_vm6, %v1167_v1, %v3340_v0  ;;  %v1188_v3 = vsel %vm1186_vm6, %v1165_v50, %v3341_v63 }
 0x190   : > { %v1189_v4 = vpack.c.bf16 %v1188_v3, %v1187_v2 }
 0x192   : > { %1274 = vmatmul.bf16.vlgmr.msrb.gmra.mxu0 %v1189_v4 }
 0x19b   : > { %v1289_v23 = vpop.f32.mrf.mxu1 }
 0x1a3   : > { %v1291_v31 = vpop.f32.mrf.mxu1 }
 0x20f   : > { %v1275_v26 = vpop.f32.mrf.mxu0 }
 0x210   : > { %v1290_v27 = vadd.f32 %v1289_v23, %v1275_v26 }
 0x212   : > { %v1297_v29 = vmul.f32 %v3343_v24, %v1290_v27 }
 0x214   : > { %v1302_v30 = vadd.f32 %v3344_v28, %v1297_v29 }
 0x216   : > { %v1306_v34 = vmul.f32 0.01, %v1302_v30  ;;  %vm1304_vm8 = vcmp.ge.f32.partialorder %v1302_v30, 0.0 }
 0x217   : > { %v1277_v32 = vpop.f32.mrf.mxu0 }
 0x218   : > { %v1292_v33 = vadd.f32 %v1291_v31, %v1277_v32  ;;  %v1308_v37 = vsel %vm1304_vm8, %v1302_v30, %v1306_v34 }
 0x219   : > { %v1360_v40 = vrot.slane %v1308_v37, 7  ;;  %v1366_v42 = vrot.slane %v1308_v37, 1 }
 0x21a   : > { %v1298_v35 = vmul.f32 %v3343_v24, %v1292_v33 }
 0x21c   : > { %v1303_v36 = vadd.f32 %v3344_v28, %v1298_v35 }
 0x21e   : > { %v1307_v38 = vmul.f32 0.01, %v1303_v36  ;;  %vm1305_vm9 = vcmp.ge.f32.partialorder %v1303_v36, 0.0 }
 0x220   : > { %v1309_v39 = vsel %vm1305_vm9, %v1303_v36, %v1307_v38 }
 0x221   : > { %v1361_v41 = vrot.slane %v1309_v39, 7  ;;  %v1367_v43 = vrot.slane %v1309_v39, 1  ;;  %v1373_v44 = vpack.c.bf16 %v1309_v39, %v1308_v37 }
 0x223   : > { %1541 = vmatmul.bf16.vlgmr.msrb.gmra.mxu3 %v1373_v44  ;;  %v1362_v45 = vsel %vm1164_vm5, %v1360_v40, %v1361_v41  ;;  %v1363_v46 = vsel %vm1164_vm5, %v1361_v41, %v1360_v40  ;;  %v1368_v47 = vsel %vm1173_vm4, %v1366_v42, %v1367_v43  ;;  %v1369_v48 = vsel %vm1173_vm4, %v1367_v43, %v1366_v42 }
 0x224   : > { %v2815_v49 = vpack.c.bf16 %v1362_v45, %v1363_v46  ;;  %v2818_v50 = vpack.c.bf16 %v1369_v48, %v1368_v47 }
 0x226   : > { %2816 = vmatmul.msk.bf16.vlgmr.msrb.gmra.mxu2 %vm2814_vm11, %v2815_v49  ;;  %2819 = vmatmul.msk.bf16.vlgmr.msra.gmra.mxu1 %vm2817_vm12, %v2818_v50 }
 0x2a3   : > { %v1556_v52 = vpop.f32.mrf.mxu1 }
 0x2a6   : > { %v1542_v51 = vpop.f32.mrf.mxu3 }
 0x2a9   : > { %v1528_v53 = vpop.f32.mrf.mxu2 }
 0x2aa   : > { %v1543_v54 = vadd.f32 %v1542_v51, %v1528_v53 }
 0x2ab   : > { %v1558_v62 = vpop.f32.mrf.mxu1 }
 0x2ac   : > { %v1557_v56 = vadd.f32 %v1556_v52, %v1543_v54 }
 0x2ae   : > { %v1564_v57 = vmul.f32 %v3345_v55, %v1557_v56  ;;  %v1544_v59 = vpop.f32.mrf.mxu3 }
 0x2b0   : > { %v1569_v58 = vadd.f32 %v3346_v25, %v1564_v57 }
 0x2b1   : > { %v1530_v60 = vpop.f32.mrf.mxu2 }
 0x2b2   : > { %vm1571_vm13 = vcmp.ge.f32.partialorder %v1569_v58, 0.0  ;;  %v1573_v18 = vmul.f32 0.01, %v1569_v58  ;;  %v1545_v61 = vadd.f32 %v1544_v59, %v1530_v60 }
 0x2b4   : > { %v1575_v63 = vsel %vm1571_vm13, %v1569_v58, %v1573_v18  ;;  %v1559_v0 = vadd.f32 %v1558_v62, %v1545_v61 }
 0x2b5   : > { %1577 = vst [vmem:[#allocation2] sm:$0xff] %v1575_v63 }
 0x2b6   : > { %v1565_v1 = vmul.f32 %v3345_v55, %v1559_v0 }
 0x2b8   : > { %v1570_v2 = vadd.f32 %v3346_v25, %v1565_v1 }
 0x2ba   : > { %vm1572_vm14 = vcmp.ge.f32.partialorder %v1570_v2, 0.0  ;;  %v1574_v3 = vmul.f32 0.01, %v1570_v2 }
 0x2bc   : > { %v1576_v4 = vsel %vm1572_vm14, %v1570_v2, %v1574_v3 }
 0x2bd   : > { %1578 = vst [vmem:[#allocation2 + $0x8] sm:$0xff] %v1576_v4 }
 0x2be PF: > { %v3153_v5 = vld [vmem:[%s4026_s3 + $0x38] sm:$0xff]  ;;  %v3152_v6 = vld [vmem:[%s4026_s3 + $0x30] sm:$0xff]  ;;  %v3151_v9 = vld [vmem:[%s4026_s3 + $0x28] sm:$0xff]  ;;  %vm3709_vm9 = vmmov 1  }
 0x2bf   : > { %1738 = vmatpush.bf16.msra.mxu1 %v3153_v5  ;;  %v3161_v7 = vld [vmem:[%s4028_s28 + $0x38] sm:$0xff]  ;;  %v3160_v8 = vld [vmem:[%s4028_s28 + $0x30] sm:$0xff]  ;;  %v3159_v10 = vld [vmem:[%s4028_s28 + $0x28] sm:$0xff] }
 0x2c0   : > { %1829 = vmatpush.bf16.msra.mxu2 %v3161_v7  ;;  %v3150_v11 = vld [vmem:[%s4026_s3 + $0x20] sm:$0xff]  ;;  %v3149_v13 = vld [vmem:[%s4026_s3 + $0x18] sm:$0xff]  ;;  %v3148_v14 = vld [vmem:[%s4026_s3 + $0x10] sm:$0xff] }
 0x2c1   : > { %v3158_v12 = vld [vmem:[%s4028_s28 + $0x20] sm:$0xff]  ;;  %v3147_v15 = vld [vmem:[%s4026_s3 + $0x8] sm:$0xff]  ;;  %v3157_v21 = vld [vmem:[%s4028_s28 + $0x18] sm:$0xff] }
 0x2c2   : > { %v3146_v16 = vld [vmem:[%s4026_s3] sm:$0xff]  ;;  %v4259_v17 = vld [vmem:[#allocation2] sm:$0xff]  ;;  %v3145_v26 = vld [vmem:[%s4020_s10 + $0x38] sm:$0xff] }
 0x2c3   : > { %1739 = vmatpush.bf16.msra.mxu1 %v3152_v6  ;;  %v3156_v22 = vld [vmem:[%s4028_s28 + $0x10] sm:$0xff]  ;;  %v3155_v23 = vld [vmem:[%s4028_s28 + $0x8] sm:$0xff]  ;;  %v3154_v24 = vld [vmem:[%s4028_s28] sm:$0xff]  ;;  %1648 = vmatpush.bf16.msra.mxu0 %v3145_v26 }
 0x2c4   : > { %1830 = vmatpush.bf16.msra.mxu2 %v3160_v8  ;;  %v4261_v19 = vld [vmem:[#allocation2 + $0x8] sm:$0xff]  ;;  %v3143_v32 = vld [vmem:[%s4020_s10 + $0x28] sm:$0xff]  ;;  %v3142_v36 = vld [vmem:[%s4020_s10 + $0x20] sm:$0xff] }
 0x2c5   : > { %v1581_v20 = vpack.c.bf16 %v4261_v19, %v4259_v17  ;;  %v3144_v27 = vld [vmem:[%s4020_s10 + $0x30] sm:$0xff]  ;;  %v3169_v28 = vld [vmem:[%s4036_s13 + $0x38] sm:$0xff]  ;;  %v3167_v33 = vld [vmem:[%s4036_s13 + $0x28] sm:$0xff] }
 0x2c6   : > { %v3185_v29 = vld [vmem:[%s4036_s13 + $0xb8] sm:$0xff]  ;;  %2071 = vmatpush.bf16.msra.mxu3 %v3169_v28  ;;  %v3168_v30 = vld [vmem:[%s4036_s13 + $0x30] sm:$0xff]  ;;  %v3183_v34 = vld [vmem:[%s4036_s13 + $0xa8] sm:$0xff] }
 0x2c7   : > { %1740 = vmatpush.bf16.msra.mxu1 %v3151_v9  ;;  %v3184_v31 = vld [vmem:[%s4036_s13 + $0xb0] sm:$0xff]  ;;  %1649 = vmatpush.bf16.msra.mxu0 %v3144_v27  ;;  %v4279_v35 = vld [vmem:[%s4062_s16] sm:$0xf]  ;;  %v3141_v40 = vld [vmem:[%s4020_s10 + $0x18] sm:$0xff]  ;;  %s4466_s16 = sld [smem:[#allocation24_spill]] }
 0x2c8   : > { %1831 = vmatpush.bf16.msra.mxu2 %v3159_v10  ;;  %v1752_v37 = vperm.slane %v4279_v35, 1  ;;  %v4284_v38 = vld [vmem:[%s4067_s2] sm:$0xf]  ;;  %v3140_v43 = vld [vmem:[%s4020_s10 + $0x10] sm:$0xff]  ;;  %v3138_v50 = vld [vmem:[%s4020_s10] sm:$0xff]  ;;  %v1662_v9 = vperm.slane %v4279_v35, 0 }
 0x2c9   : > { %v1755_v42 = vperm.slane %v4284_v38, 1  ;;  %v3139_v46 = vld [vmem:[%s4020_s10 + $0x8] sm:$0xff]  ;;  %v3177_v52 = vld [vmem:[%s4036_s13 + $0x78] sm:$0xff]  ;;  %v3176_v56 = vld [vmem:[%s4036_s13 + $0x70] sm:$0xff]  ;;  %v1665_v10 = vperm.slane %v4284_v38, 0 }
 0x2ca   : > { %2072 = vmatpush.bf16.msra.mxu3 %v3168_v30  ;;  %v3175_v25 = vld [vmem:[%s4036_s13 + $0x68] sm:$0xff]  ;;  %v3174_v57 = vld [vmem:[%s4036_s13 + $0x60] sm:$0xff]  ;;  %v3173_v60 = vld [vmem:[%s4036_s13 + $0x58] sm:$0xff] }
 0x2cb   : > { %1741 = vmatpush.bf16.msra.mxu1 %v3150_v11  ;;  %1650 = vmatpush.bf16.msra.mxu0 %v3143_v32  ;;  %v3166_v58 = vld [vmem:[%s4036_s13 + $0x20] sm:$0xff]  ;;  %v3165_v18 = vld [vmem:[%s4036_s13 + $0x18] sm:$0xff]  ;;  %v3172_v62 = vld [vmem:[%s4036_s13 + $0x50] sm:$0xff] }
 0x2cc   : > { %1832 = vmatpush.bf16.msra.mxu2 %v3158_v12  ;;  %v3182_v59 = vld [vmem:[%s4036_s13 + $0xa0] sm:$0xff]  ;;  %v3181_v61 = vld [vmem:[%s4036_s13 + $0x98] sm:$0xff]  ;;  %v3164_v63 = vld [vmem:[%s4036_s13 + $0x10] sm:$0xff] }
 0x2cd   : > { %v3180_v0 = vld [vmem:[%s4036_s13 + $0x90] sm:$0xff]  ;;  %v3171_v1 = vld [vmem:[%s4036_s13 + $0x48] sm:$0xff]  ;;  %v3170_v4 = vld [vmem:[%s4036_s13 + $0x40] sm:$0xff]  ;;  %p3082_p5 = scmp.ne.s32.totalorder %s4466_s16, 4 }
 0x2ce   : > { %2073 = vmatpush.bf16.msra.mxu3 %v3167_v33  ;;  %v3163_v2 = vld [vmem:[%s4036_s13 + $0x8] sm:$0xff]  ;;  %v3162_v5 = vld [vmem:[%s4036_s13] sm:$0xff]  ;;  %v3193_v7 = vld [vmem:[%s4038_s7 + $0x38] sm:$0xff] }
 0x2cf   : > { %1742 = vmatpush.bf16.msra.mxu1 %v3149_v13  ;;  %1651 = vmatpush.bf16.msra.mxu0 %v3142_v36  ;;  %v3179_v3 = vld [vmem:[%s4036_s13 + $0x88] sm:$0xff]  ;;  %v3178_v6 = vld [vmem:[%s4036_s13 + $0x80] sm:$0xff]  ;;  %v3192_v8 = vld [vmem:[%s4038_s7 + $0x30] sm:$0xff] }
 0x2d0   : > { %1833 = vmatpush.bf16.msra.mxu2 %v3157_v21  ;;  %v3191_v11 = vld [vmem:[%s4038_s7 + $0x28] sm:$0xff]  ;;  %v1846_v21 = vperm.slane %v4284_v38, 2  ;;  %v3189_v26 = vld [vmem:[%s4038_s7 + $0x18] sm:$0xff]  ;;  %v3188_v33 = vld [vmem:[%s4038_s7 + $0x10] sm:$0xff] }
 0x2d2   : > { %2074 = vmatpush.bf16.msra.mxu3 %v3166_v58 }
 0x2d3   : > { %1743 = vmatpush.bf16.msra.mxu1 %v3148_v14  ;;  %1652 = vmatpush.bf16.msra.mxu0 %v3141_v40  ;;  %v1843_v14 = vperm.slane %v4279_v35, 2 }
 0x2d4   : > { %1834 = vmatpush.bf16.msra.mxu2 %v3156_v22 }
 0x2d6   : > { %2075 = vmatpush.bf16.msra.mxu3 %v3165_v18 }
 0x2d7   : > { %1744 = vmatpush.bf16.msra.mxu1 %v3147_v15  ;;  %1653 = vmatpush.bf16.msra.mxu0 %v3140_v43 }
 0x2d8   : > { %1835 = vmatpush.bf16.msra.mxu2 %v3155_v23 }
 0x2da   : > { %2076 = vmatpush.bf16.msra.mxu3 %v3164_v63  ;;  %v3200_v63 = vld [vmem:[%s4038_s7 + $0x70] sm:$0xff] }
 0x2db   : > { %1745 = vmatpush.bf16.msra.mxu1 %v3146_v16  ;;  %1654 = vmatpush.bf16.msra.mxu0 %v3139_v46  ;;  %v3190_v16 = vld [vmem:[%s4038_s7 + $0x20] sm:$0xff] }
 0x2dc   : > { %1836 = vmatpush.bf16.msra.mxu2 %v3154_v24  ;;  %v1903_v24 = vlaneseq }
 0x2de   : > { %1746 = vmatmul.bf16.vlgmr.msra.gmra.mxu1 %v1581_v20  ;;  %2077 = vmatpush.bf16.msra.mxu3 %v3163_v2  ;;  %v1904_v32 = vshrl.u32 %v1903_v24, 7  ;;  %v3197_v2 = vld [vmem:[%s4038_s7 + $0x58] sm:$0xff] }
 0x2df   : > { %2099 = vmatpush.bf16.msrb.mxu1 %v3185_v29  ;;  %1655 = vmatpush.bf16.msra.mxu0 %v3138_v50 }
 0x2e0   : > { %2273 = vmatpush.bf16.msrb.mxu2 %v3193_v7  ;;  %v1905_v43 = vadd.s32 8, %v1904_v32  ;;  %vm1906_vm5 = vcmp.ge.s32.totalorder %v1904_v32, 1  ;;  %vm1910_vm6 = vcmp.lt.s32.totalorder %v1904_v32, 1  ;;  %vm1919_vm8 = vcmp.lt.s32.totalorder %v1904_v32, 7 }
 0x2e1   : > { %vm3012_vm10 = vmpackc.low %vm3709_vm9, %vm1906_vm5 }
 0x2e2   : > { %1656 = vmatmul.bf16.vlgmr.msra.gmra.mxu0 %v1581_v20  ;;  %2078 = vmatpush.bf16.msra.mxu3 %v3162_v5  ;;  %vm1916_vm7 = vcmp.lt.s32.totalorder %v1905_v43, 15  ;;  %v3194_v5 = vld [vmem:[%s4038_s7 + $0x40] sm:$0xff] }
 0x2e3   : > { %2100 = vmatpush.bf16.msrb.mxu1 %v3184_v31  ;;  %2085 = vmatpush.bf16.msrb.mxu0 %v3177_v52  ;;  %v3186_v52 = vld [vmem:[%s4038_s7] sm:$0xff]  ;;  %vm3015_vm11 = vmpackc.low %vm1916_vm7, %vm3709_vm9 }
 0x2e4   : > { %2274 = vmatpush.bf16.msrb.mxu2 %v3192_v8 }
 0x2e7   : > { %2101 = vmatpush.bf16.msrb.mxu1 %v3183_v34  ;;  %2086 = vmatpush.bf16.msrb.mxu0 %v3176_v56 }
 0x2e8   : > { %2275 = vmatpush.bf16.msrb.mxu2 %v3191_v11 }
 0x2eb   : > { %2087 = vmatpush.bf16.msrb.mxu0 %v3175_v25  ;;  %2102 = vmatpush.bf16.msrb.mxu1 %v3182_v59 }
 0x2ec   : > { %2276 = vmatpush.bf16.msrb.mxu2 %v3190_v16 }
 0x2ef   : > { %2088 = vmatpush.bf16.msrb.mxu0 %v3174_v57  ;;  %2103 = vmatpush.bf16.msrb.mxu1 %v3181_v61 }
 0x2f0   : > { %2277 = vmatpush.bf16.msrb.mxu2 %v3189_v26 }
 0x2f3   : > { %2089 = vmatpush.bf16.msrb.mxu0 %v3173_v60  ;;  %2104 = vmatpush.bf16.msrb.mxu1 %v3180_v0  ;;  %v3199_v0 = vld [vmem:[%s4038_s7 + $0x68] sm:$0xff] }
 0x2f4   : > { %2278 = vmatpush.bf16.msrb.mxu2 %v3188_v33 }
 0x2f7   : > { %2090 = vmatpush.bf16.msrb.mxu0 %v3172_v62  ;;  %2105 = vmatpush.bf16.msrb.mxu1 %v3179_v3  ;;  %v3201_v62 = vld [vmem:[%s4038_s7 + $0x78] sm:$0xff]  ;;  %v3196_v3 = vld [vmem:[%s4038_s7 + $0x50] sm:$0xff] }
 0x2f8   : > { %2287 = vmatpush.bf16.msrb.mxu3 %v3201_v62 }
 0x2fb   : > { %2091 = vmatpush.bf16.msrb.mxu0 %v3171_v1  ;;  %2106 = vmatpush.bf16.msrb.mxu1 %v3178_v6  ;;  %v3198_v1 = vld [vmem:[%s4038_s7 + $0x60] sm:$0xff] }
 0x2fc   : > { %2288 = vmatpush.bf16.msrb.mxu3 %v3200_v63 }
 0x2ff   : > { %2092 = vmatpush.bf16.msrb.mxu0 %v3170_v4  ;;  %v3195_v4 = vld [vmem:[%s4038_s7 + $0x48] sm:$0xff] }
 0x300   : > { %2289 = vmatpush.bf16.msrb.mxu3 %v3199_v0 }
 0x304   : > { %2290 = vmatpush.bf16.msrb.mxu3 %v3198_v1 }
 0x308   : > { %2291 = vmatpush.bf16.msrb.mxu3 %v3197_v2 }
 0x30c   : > { %2292 = vmatpush.bf16.msrb.mxu3 %v3196_v3 }
 0x310   : > { %2293 = vmatpush.bf16.msrb.mxu3 %v3195_v4 }
 0x314   : > { %2294 = vmatpush.bf16.msrb.mxu3 %v3194_v5 }
 0x35b   : > { %v1747_v39 = vpop.f32.mrf.mxu1 }
 0x35c   : > { %v1753_v41 = vmul.f32 %v1752_v37, %v1747_v39 }
 0x35e   : > { %v1756_v44 = vadd.f32 %v1755_v42, %v1753_v41 }
 0x35f   : > { %v1657_v12 = vpop.f32.mrf.mxu0 }
 0x360   : > { %v1760_v49 = vmul.f32 0.01, %v1756_v44  ;;  %vm1758_vm15 = vcmp.ge.f32.partialorder %v1756_v44, 0.0  ;;  %v1663_v13 = vmul.f32 %v1662_v9, %v1657_v12  ;;  %v2116_v12 = vperm.slane %v4284_v38, 3 }
 0x362   : > { %v1762_v53 = vsel %vm1758_vm15, %v1756_v44, %v1760_v49  ;;  %v1666_v15 = vadd.f32 %v1665_v10, %v1663_v13  ;;  %v3187_v44 = vld [vmem:[%s4038_s7 + $0x8] sm:$0xff] }
 0x363   : > { %v1749_v45 = vpop.f32.mrf.mxu1  ;;  %2279 = vmatpush.bf16.msrb.mxu2 %v3187_v44 }
 0x364   : > { %v1754_v47 = vmul.f32 %v1752_v37, %v1749_v45  ;;  %v1670_v23 = vmul.f32 0.01, %v1666_v15  ;;  %vm1668_vm1 = vcmp.ge.f32.partialorder %v1666_v15, 0.0 }
 0x366   : > { %v1757_v48 = vadd.f32 %v1755_v42, %v1754_v47  ;;  %v1672_v31 = vsel %vm1668_vm1, %v1666_v15, %v1670_v23 }
 0x367   : > { %v1659_v27 = vpop.f32.mrf.mxu0  ;;  %v2125_v40 = vpack.c.bf16 %v1672_v31, %v1672_v31  ;;  %2280 = vmatpush.bf16.msrb.mxu2 %v3186_v52 }
 0x368   : > { %vm1759_vm0 = vcmp.ge.f32.partialorder %v1757_v48, 0.0  ;;  %v1761_v51 = vmul.f32 0.01, %v1757_v48  ;;  %v1664_v29 = vmul.f32 %v1662_v9, %v1659_v27 }
 0x36a   : > { %v1763_v54 = vsel %vm1759_vm0, %v1757_v48, %v1761_v51  ;;  %v1667_v30 = vadd.f32 %v1665_v10, %v1664_v29  ;;  %v2131_v48 = vunpack.c.l.b16 %v2125_v40  ;;  %v2113_v10 = vperm.slane %v4279_v35, 3 }
 0x36b   : > { %v1764_v55 = vpack.c.bf16 %v1763_v54, %v1762_v53 }
 0x36c   : > { %vm1669_vm2 = vcmp.ge.f32.partialorder %v1667_v30, 0.0  ;;  %v1671_v37 = vmul.f32 0.01, %v1667_v30 }
 0x36d   : > { %1837 = vmatmul.bf16.vlgmr.msra.gmra.mxu2 %v1764_v55 }
 0x36e   : > { %v1673_v41 = vsel %vm1669_vm2, %v1667_v30, %v1671_v37 }
 0x36f   : > { %v2126_v45 = vpack.c.bf16 %v1673_v41, %v1673_v41 }
 0x371   : > { %v2132_v49 = vunpack.c.l.b16 %v2126_v45 }
 0x373   : > { %v2133_v25 = vpack.c.b16 %v2132_v49, %v2131_v48 }
 0x37d   : > { %2281 = vmatmul.bf16.vlgmr.msrb.gmra.mxu2 %v2133_v25 }
 0x3f0   : > { %v1838_v20 = vpop.f32.mrf.mxu2 }
 0x3f1   : > { %v1844_v22 = vmul.f32 %v1843_v14, %v1838_v20 }
 0x3f3   : > { %v1847_v28 = vadd.f32 %v1846_v21, %v1844_v22 }
 0x3f5   : > { %v1851_v34 = vmul.f32 0.01, %v1847_v28  ;;  %vm1849_vm3 = vcmp.ge.f32.partialorder %v1847_v28, 0.0 }
 0x3f7   : > { %v1853_v46 = vsel %vm1849_vm3, %v1847_v28, %v1851_v34  ;;  %v3347_v34 = vld [vmem:[%s828_s1] ss:$0 sm:$0xff] }
 0x3f8   : > { %v1840_v36 = vpop.f32.mrf.mxu2  ;;  %v1908_v51 = vrot.slane %v1853_v46, 7  ;;  %v1917_v54 = vrot.slane %v1853_v46, 1 }
 0x3f9   : > { %v1845_v39 = vmul.f32 %v1843_v14, %v1840_v36 }
 0x3fb   : > { %v1848_v42 = vadd.f32 %v1846_v21, %v1845_v39 }
 0x3fd   : > { %vm1850_vm4 = vcmp.ge.f32.partialorder %v1848_v42, 0.0  ;;  %v1852_v47 = vmul.f32 0.01, %v1848_v42 }
 0x3ff   : > { %v1854_v50 = vsel %vm1850_vm4, %v1848_v42, %v1852_v47 }
 0x400   : > { %v1909_v53 = vrot.slane %v1854_v50, 7  ;;  %v1918_v55 = vrot.slane %v1854_v50, 1  ;;  %v1925_v56 = vpack.c.bf16 %v1854_v50, %v1853_v46  ;;  %v2282_v33 = vpop.f32.mrf.mxu2 }
 0x401   : > { %v2283_v36 = vadd.f32 %v3347_v34, %v2282_v33 }
 0x402   : > { %2093 = vmatmul.bf16.vlgmr.msrb.gmra.mxu0 %v1925_v56  ;;  %v1911_v57 = vsel %vm1910_vm6, %v1908_v51, %v1909_v53  ;;  %v1912_v58 = vsel %vm1910_vm6, %v1909_v53, %v1908_v51  ;;  %v1920_v59 = vsel %vm1919_vm8, %v1917_v54, %v1918_v55  ;;  %v1921_v60 = vsel %vm1919_vm8, %v1918_v55, %v1917_v54 }
 0x403   : > { %v3013_v18 = vpack.c.bf16 %v1911_v57, %v1912_v58  ;;  %v3016_v61 = vpack.c.bf16 %v1921_v60, %v1920_v59 }
 0x405   : > { %3014 = vmatmul.msk.bf16.vlgmr.msra.gmra.mxu3 %vm3012_vm10, %v3013_v18  ;;  %3017 = vmatmul.msk.bf16.vlgmr.msrb.gmra.mxu1 %vm3015_vm11, %v3016_v61 }
 0x408   : > { %v2284_v41 = vpop.f32.mrf.mxu2 }
 0x409   : > { %v2285_v43 = vadd.f32 %v3347_v34, %v2284_v41 }
 0x47f   : > { %v2094_v6 = vpop.f32.mrf.mxu0 }
 0x482   : > { %v2108_v7 = vpop.f32.mrf.mxu1 }
 0x487   : > { %v2096_v15 = vpop.f32.mrf.mxu0 }
 0x488   : > { %v2080_v8 = vpop.f32.mrf.mxu3 }
 0x489   : > { %v2095_v9 = vadd.f32 %v2094_v6, %v2080_v8 }
 0x48a   : > { %v2110_v21 = vpop.f32.mrf.mxu1 }
 0x48b   : > { %v2109_v11 = vadd.f32 %v2108_v7, %v2095_v9 }
 0x48d   : > { %v2114_v13 = vmul.f32 %v2113_v10, %v2109_v11 }
 0x48f   : > { %v2117_v14 = vadd.f32 %v2116_v12, %v2114_v13 }
 0x490   : > { %v2082_v16 = vpop.f32.mrf.mxu3 }
 0x491   : > { %v2097_v20 = vadd.f32 %v2096_v15, %v2082_v16  ;;  %v2121_v22 = vmul.f32 0.01, %v2117_v14  ;;  %vm2119_vm12 = vcmp.ge.f32.partialorder %v2117_v14, 0.0 }
 0x493   : > { %v2111_v23 = vadd.f32 %v2110_v21, %v2097_v20  ;;  %v2123_v27 = vsel %vm2119_vm12, %v2117_v14, %v2121_v22 }
 0x494   : > { %v2127_v29 = vpack.c.bf16 %v2123_v27, %v2123_v27 }
 0x495   : > { %v2115_v24 = vmul.f32 %v2113_v10, %v2111_v23 }
 0x496   : > { %v2137_v31 = vunpack.c.l.b16 %v2127_v29 }
 0x497   : > { %v2118_v26 = vadd.f32 %v2116_v12, %v2115_v24 }
 0x499   : > { %v2122_v28 = vmul.f32 0.01, %v2118_v26  ;;  %vm2120_vm13 = vcmp.ge.f32.partialorder %v2118_v26, 0.0 }
 0x49b   : > { %v2124_v35 = vsel %vm2120_vm13, %v2118_v26, %v2122_v28 }
 0x49c   : > { %v2128_v30 = vpack.c.bf16 %v2124_v35, %v2124_v35 }
 0x49e   : > { %v2138_v38 = vunpack.c.l.b16 %v2128_v30 }
 0x4a0   : > { %v2139_v32 = vpack.c.b16 %v2138_v38, %v2137_v31 }
 0x4a2   : > { %2295 = vmatmul.bf16.vlgmr.msrb.gmra.mxu3 %v2139_v32 }
 0x525   : > { %v2296_v37 = vpop.f32.mrf.mxu3 }
 0x526   : > { %v2297_v39 = vadd.f32 %v2296_v37, %v2283_v36 }
 0x528   : > { %v2301_v40 = vmul.f32 0.2, %v2297_v39 }
 0x52a   : > { %v2303_v42 = vadd.f32 %v2301_v40, %v4259_v17 }
 0x52c   : > { %vm2305_vm14 = vcmp.ge.f32.partialorder %v2303_v42, 0.0  ;;  %v2307_v44 = vmul.f32 0.01, %v2303_v42 }
 0x52d   : > { %v2298_v45 = vpop.f32.mrf.mxu3 }
 0x52e   : > { %v2309_v46 = vsel %vm2305_vm14, %v2303_v42, %v2307_v44  ;;  %v2299_v47 = vadd.f32 %v2298_v45, %v2285_v43 }
 0x52f   : > { %2311 = vst [vmem:[#allocation2] sm:$0xff] %v2309_v46 }
 0x530   : > { %v2302_v48 = vmul.f32 0.2, %v2299_v47 }
 0x532   : > { %v2304_v49 = vadd.f32 %v2302_v48, %v4261_v19 }
 0x533   : > { %2316 = sbr.rel (%p3082_p5) target bundleno = 1344 (0x540), region = 140 }
 0x534   : > { %vm2306_vm15 = vcmp.ge.f32.partialorder %v2304_v49, 0.0  ;;  %v2308_v50 = vmul.f32 0.01, %v2304_v49 }
 0x536   : > { %v2310_v51 = vsel %vm2306_vm15, %v2304_v49, %v2308_v50 }
 0x537   : > { %2312 = vst [vmem:[#allocation2 + $0x8] sm:$0xff] %v2310_v51 }
 0x538   : > { %v2317_v52 = vld [vmem:[#allocation2] sm:$0xff] }
 0x539   : > { %2319 = vst [vmem:[%s4057_s9] sm:$0xff] %v2317_v52 }
 0x53e   : > { %v2318_v17 = vld [vmem:[#allocation2 + $0x8] sm:$0xff] }
 0x53f   : > { %2320 = vst [vmem:[%s4057_s9 + $0x8] sm:$0xff] %v2318_v17 }
 0x540 PF: > { %s40_s23 = sadd.s32 1, %s3700_s23   ;;  %s4467_s0 = sld [smem:[#allocation22_spill]] }
 0x541   : > { %p37_p6 = scmp.ge.s32.totalorder %s40_s23, 12   ;;  %s4468_s30 = sld [smem:[#allocation23_spill]] }
 0x542   : > { %s4469_s20 = sld [smem:[#allocation31_spill]] }
 0x543   : > { %s4470_s21 = sld [smem:[#allocation26_spill]]  ;;  %39 = sbr.rel (!%p37_p6) target bundleno = 32 (0x20), region = 230 }
 0x544   : > { %s4471_s1 = sld [smem:[#allocation27_spill]] }
 0x545   : > { %s4472_s22 = sld [smem:[#allocation29_spill]] }
 0x546   : > { %s4473_s2 = sld [smem:[#allocation30_spill]] }
 0x548   :  { %2342 = vsyncpa [#allocation4], 1 }
 0x549   :  { %2344 = vsyncpa [#allocation4 + $0x1], 1 }
 0x54a   :  { %2345 = vsyncpa [#allocation6], 1 }
 0x54b   :  { %2346 = vsyncpa [#allocation9], 1 }
 0x54c   :  { %2348 = vsyncpa [#allocation9 + $0x1], 1 }
 0x54d   :  { %2349 = vsyncpa [#allocation12], 1 }
 0x54e   :  { %2351 = vsyncpa [#allocation12 + $0x1], 1 }
 0x54f   :  { %2352 = vsyncpa [#allocation15], 1 }
 0x550   :  { %2354 = vsyncpa [#allocation15 + $0x1], 1 }

</bundles_post_ra>
